<compile_context>
chip_gen: v7x
topology: tpu7x:2x2x1
jax: 0.10.0
libtpu: 0.0.40
codegen_flags: <defaults>
</compile_context>

<pallas_src>
import functools

import jax
import jax.numpy as jnp
from jax.experimental import pallas as pl
from jax.experimental.pallas import tpu as pltpu

LANE = 128
NEG_LARGE = -1e30  # padded-logit lanes: exp underflows to 0 in f32 log_softmax


def _round_up(n, m):
    return ((n + m - 1) // m) * m


def _pad2(a, rows, cols):
    r, c = a.shape
    return jnp.pad(a, ((0, rows - r), (0, cols - c)))


def _default_tb(B):
    bp8 = _round_up(B, 8)
    if bp8 >= 512:
        # Two batch tiles: feeds both TensorCores on v7x ("parallel" grid axis)
        # while keeping tiles >=256 rows here (full MXU M height); near-neutral
        # on single-TC v5e/v6e (one extra ~0.35us grid step).
        return _round_up((bp8 + 1) // 2, LANE)
    return bp8  # single tile: per-step overhead dominates at small B


def _mlp_kernel(x_ref, w1_ref, b1_ref, w2_ref, b2_ref, w3_ref, b3_ref,
                w4_ref, b4_ref, out_ref):
    # fc1 + ReLU. x is DMA'd as f32, cast to bf16 at the MXU input; accumulate
    # in f32. Dropout = identity in eval mode.
    x = x_ref[...].astype(jnp.bfloat16)
    h = jnp.dot(x, w1_ref[...], preferred_element_type=jnp.float32) + b1_ref[...]
    h = jnp.maximum(h, 0.0)

    # fc2 + ReLU
    h = jnp.dot(h.astype(jnp.bfloat16), w2_ref[...],
                preferred_element_type=jnp.float32) + b2_ref[...]
    h = jnp.maximum(h, 0.0)

    # fc3 + ReLU
    h = jnp.dot(h.astype(jnp.bfloat16), w3_ref[...],
                preferred_element_type=jnp.float32) + b3_ref[...]
    h = jnp.maximum(h, 0.0)

    # fc4 (f32 weights) + log_softmax(dim=1). Padded w4 columns are zero and
    # b4's padded lanes hold NEG_LARGE, so padded logits vanish automatically.
    logits = jnp.dot(h, w4_ref[...],
                     preferred_element_type=jnp.float32) + b4_ref[...]
    m = jnp.max(logits, axis=-1, keepdims=True)
    shifted = logits - m
    lse = jnp.log(jnp.sum(jnp.exp(shifted), axis=-1, keepdims=True))
    out_ref[...] = (shifted - lse).astype(out_ref.dtype)


def prepare_params(params):
    """One-time parameter prep (hoisted out of the forward path).

    Pads every feature dim up to a multiple of 128 (lane-dense), casts fc1..fc3
    weights to bf16 (MXU inputs), keeps fc4 in f32, and bakes the class mask
    into b4's padded lanes. Returns (prepared_dict, out_dim).
    """
    dims_in = [params[f"w{i}"].shape[0] for i in range(1, 5)]
    dims_out = [params[f"w{i}"].shape[1] for i in range(1, 5)]
    dp = [_round_up(dims_in[0], LANE)] + [_round_up(d, LANE) for d in dims_out]

    prepared = {}
    for i in range(1, 5):
        din_p, dout_p = dp[i - 1], dp[i]
        w = _pad2(params[f"w{i}"], din_p, dout_p)
        b = _pad2(params[f"b{i}"], 1, dout_p).astype(jnp.float32)
        if i < 4:
            w = w.astype(jnp.bfloat16)
        else:
            w = w.astype(jnp.float32)
            lane = jnp.arange(dout_p)[None, :]
            b = jnp.where(lane < dims_out[3], b, NEG_LARGE)
        prepared[f"w{i}"] = w
        prepared[f"b{i}"] = b
    return jax.device_put(prepared), dims_out[3]


def mlp_forward(x, prepared, *, out_dim, tb=None):
    """x: [B, C, H, W] float32. prepared: output of prepare_params()."""
    B = x.shape[0]
    x2d = x.reshape(B, -1).astype(jnp.float32)   # == torch x.view(B, -1)
    d_in = x2d.shape[1]

    dp = [prepared["w1"].shape[0]] + [prepared[f"w{i}"].shape[1]
                                      for i in range(1, 5)]

    if tb is None:
        tb = _default_tb(B)
    tb = max(8, min(_round_up(tb, 8), _round_up(B, 8)))
    bp = _round_up(B, tb)
    if bp != B or dp[0] != d_in:
        x2d = jnp.pad(x2d, ((0, bp - B), (0, dp[0] - d_in)))
    n_tiles = bp // tb

    in_specs = [pl.BlockSpec((tb, dp[0]), lambda i: (i, 0))]
    wb = []
    for i in range(1, 5):
        # Constant block index -> weights/biases loaded once, VMEM-resident.
        in_specs.append(pl.BlockSpec((dp[i - 1], dp[i]), lambda i_: (0, 0)))
        in_specs.append(pl.BlockSpec((1, dp[i]), lambda i_: (0, 0)))
        wb += [prepared[f"w{i}"], prepared[f"b{i}"]]
    out_spec = pl.BlockSpec((tb, dp[4]), lambda i: (i, 0))

    flops = 2 * bp * sum(dp[i] * dp[i + 1] for i in range(4))
    bytes_accessed = (
        bp * dp[0] * 4                                   # x (f32)
        + sum(dp[i] * dp[i + 1] * 2 for i in range(3))   # w1..w3 (bf16)
        + dp[3] * dp[4] * 4                              # w4 (f32)
        + sum(dp[i + 1] * 4 for i in range(4))           # biases (f32)
        + bp * dp[4] * 4                                 # out (f32)
    )
    cost = pl.CostEstimate(flops=flops,
                           transcendentals=bp * dp[4],
                           bytes_accessed=bytes_accessed)

    out_padded = pl.pallas_call(
        _mlp_kernel,
        out_shape=jax.ShapeDtypeStruct((bp, dp[4]), jnp.float32),
        grid=(n_tiles,),
        in_specs=in_specs,
        out_specs=out_spec,
        compiler_params=pltpu.CompilerParams(
            dimension_semantics=("parallel",)),
        cost_estimate=cost,
    )(x2d, *wb)

    return out_padded[:B, :out_dim]


def init_params(key, input_dim, h1, h2, h3, out_dim):
    """Deterministic init. Weights stored as [in, out] (transposed vs torch)."""
    dims = [(input_dim, h1), (h1, h2), (h2, h3), (h3, out_dim)]
    params = {}
    keys = jax.random.split(key, len(dims) * 2)
    for i, (din, dout) in enumerate(dims):
        bound = 1.0 / jnp.sqrt(din)  # torch nn.Linear default init range
        w = jax.random.uniform(keys[2 * i], (din, dout), jnp.float32, -bound, bound)
        b = jax.random.uniform(keys[2 * i + 1], (1, dout), jnp.float32, -bound, bound)
        params[f"w{i + 1}"] = w
        params[f"b{i + 1}"] = b
    return params


def reference_forward(x, params):
    """Plain-JAX f32 reference for correctness check (eval-mode dropout)."""
    h = x.reshape(x.shape[0], -1)
    for i in range(1, 4):
        h = jnp.maximum(h @ params[f"w{i}"] + params[f"b{i}"], 0.0)
    logits = h @ params["w4"] + params["b4"]
    return jax.nn.log_softmax(logits, axis=1)


if __name__ == "__main__":
    # Shapes consistent with the module: C=1, H=W=16 -> input_dim=256.
    # B=512 -> default tb=256 -> 2 parallel grid steps (feeds both TCs on v7x).
    B, C, H, W = 512, 1, 16, 16
    input_dim = C * H * W
    hidden1, hidden2, hidden3, output_dim = 128, 64, 32, 10

    key = jax.random.PRNGKey(0)
    kx, kp = jax.random.split(key)
    x = jax.random.normal(kx, (B, C, H, W), jnp.float32)
    params = init_params(kp, input_dim, hidden1, hidden2, hidden3, output_dim)

    # One-time parameter prep (hoisted out of the steady-state call path).
    prepared, out_dim = prepare_params(params)
    fwd = jax.jit(functools.partial(mlp_forward, out_dim=out_dim))

    out = jax.block_until_ready(fwd(x, prepared))
    ref = reference_forward(x, params)

    assert out.shape == (B, output_dim)
    assert bool(jnp.all(jnp.isfinite(out))), "non-finite values in output"
    # bf16 MXU inputs for fc1..fc3 vs f32 reference -> relaxed tolerance.
    assert jnp.allclose(out, ref, atol=2e-2, rtol=2e-2), "mismatch vs reference"

    print("KERNEL_OK")
</pallas_src>

<mosaic_0001>
module attributes {stable_mosaic.version = 11 : i64} {
  func.func @_mlp_kernel(%arg0: i32, %arg1: memref<256x256xf32, #tpu.memory_space<vmem>>, %arg2: memref<256x128xbf16, #tpu.memory_space<vmem>>, %arg3: memref<1x128xf32, #tpu.memory_space<vmem>>, %arg4: memref<128x128xbf16, #tpu.memory_space<vmem>>, %arg5: memref<1x128xf32, #tpu.memory_space<vmem>>, %arg6: memref<128x128xbf16, #tpu.memory_space<vmem>>, %arg7: memref<1x128xf32, #tpu.memory_space<vmem>>, %arg8: memref<128x128xf32, #tpu.memory_space<vmem>>, %arg9: memref<1x128xf32, #tpu.memory_space<vmem>>, %arg10: memref<256x128xf32, #tpu.memory_space<vmem>>) attributes {dimension_semantics = [#tpu.dimension_semantics<parallel>], iteration_bounds = array<i64: 2>, scalar_prefetch = 0 : i64, scratch_operands = 0 : i64, tpu.core_type = #tpu.core_type<tc>, window_params = [{transform_indices = @transform_0, window_bounds = array<i64: 256, 256>}, {pipeline_mode = #tpu.pipeline_mode<synchronous>, transform_indices = @transform_1, window_bounds = array<i64: 256, 128>}, {pipeline_mode = #tpu.pipeline_mode<synchronous>, transform_indices = @transform_2, window_bounds = array<i64: 1, 128>}, {pipeline_mode = #tpu.pipeline_mode<synchronous>, transform_indices = @transform_3, window_bounds = array<i64: 128, 128>}, {pipeline_mode = #tpu.pipeline_mode<synchronous>, transform_indices = @transform_4, window_bounds = array<i64: 1, 128>}, {pipeline_mode = #tpu.pipeline_mode<synchronous>, transform_indices = @transform_5, window_bounds = array<i64: 128, 128>}, {pipeline_mode = #tpu.pipeline_mode<synchronous>, transform_indices = @transform_6, window_bounds = array<i64: 1, 128>}, {pipeline_mode = #tpu.pipeline_mode<synchronous>, transform_indices = @transform_7, window_bounds = array<i64: 128, 128>}, {pipeline_mode = #tpu.pipeline_mode<synchronous>, transform_indices = @transform_8, window_bounds = array<i64: 1, 128>}, {transform_indices = @transform_9, window_bounds = array<i64: 256, 128>}]} {
    %c0 = arith.constant 0 : index
    %c0_0 = arith.constant 0 : index
    %0 = vector.load %arg1[%c0, %c0_0] : memref<256x256xf32, #tpu.memory_space<vmem>>, vector<256x256xf32>
    %1 = arith.truncf %0 : vector<256x256xf32> to vector<256x256xbf16>
    %c0_1 = arith.constant 0 : index
    %c0_2 = arith.constant 0 : index
    %2 = vector.load %arg2[%c0_1, %c0_2] : memref<256x128xbf16, #tpu.memory_space<vmem>>, vector<256x128xbf16>
    %cst = arith.constant dense<0.000000e+00> : vector<256x128xf32>
    %3 = tpu.matmul %1, %2, %cst {dimension_numbers = #tpu.dot_dimension_numbers<[1], [0], [0], [1], [0, 0, 1, 1], [], []>} : vector<256x256xbf16>, vector<256x128xbf16>, vector<256x128xf32> -> vector<256x128xf32>
    %c0_3 = arith.constant 0 : index
    %c0_4 = arith.constant 0 : index
    %4 = vector.load %arg3[%c0_3, %c0_4] : memref<1x128xf32, #tpu.memory_space<vmem>>, vector<1x128xf32>
    %5 = vector.broadcast %4 : vector<1x128xf32> to vector<256x128xf32>
    %6 = arith.addf %3, %5 : vector<256x128xf32>
    %cst_5 = arith.constant 0.000000e+00 : f32
    %7 = vector.broadcast %cst_5 : f32 to vector<256x128xf32>
    %8 = arith.maximumf %6, %7 : vector<256x128xf32>
    %9 = arith.truncf %8 : vector<256x128xf32> to vector<256x128xbf16>
    %c0_6 = arith.constant 0 : index
    %c0_7 = arith.constant 0 : index
    %10 = vector.load %arg4[%c0_6, %c0_7] : memref<128x128xbf16, #tpu.memory_space<vmem>>, vector<128x128xbf16>
    %cst_8 = arith.constant dense<0.000000e+00> : vector<256x128xf32>
    %11 = tpu.matmul %9, %10, %cst_8 {dimension_numbers = #tpu.dot_dimension_numbers<[1], [0], [0], [1], [0, 0, 1, 1], [], []>} : vector<256x128xbf16>, vector<128x128xbf16>, vector<256x128xf32> -> vector<256x128xf32>
    %c0_9 = arith.constant 0 : index
    %c0_10 = arith.constant 0 : index
    %12 = vector.load %arg5[%c0_9, %c0_10] : memref<1x128xf32, #tpu.memory_space<vmem>>, vector<1x128xf32>
    %13 = vector.broadcast %12 : vector<1x128xf32> to vector<256x128xf32>
    %14 = arith.addf %11, %13 : vector<256x128xf32>
    %cst_11 = arith.constant 0.000000e+00 : f32
    %15 = vector.broadcast %cst_11 : f32 to vector<256x128xf32>
    %16 = arith.maximumf %14, %15 : vector<256x128xf32>
    %17 = arith.truncf %16 : vector<256x128xf32> to vector<256x128xbf16>
    %c0_12 = arith.constant 0 : index
    %c0_13 = arith.constant 0 : index
    %18 = vector.load %arg6[%c0_12, %c0_13] : memref<128x128xbf16, #tpu.memory_space<vmem>>, vector<128x128xbf16>
    %cst_14 = arith.constant dense<0.000000e+00> : vector<256x128xf32>
    %19 = tpu.matmul %17, %18, %cst_14 {dimension_numbers = #tpu.dot_dimension_numbers<[1], [0], [0], [1], [0, 0, 1, 1], [], []>} : vector<256x128xbf16>, vector<128x128xbf16>, vector<256x128xf32> -> vector<256x128xf32>
    %c0_15 = arith.constant 0 : index
    %c0_16 = arith.constant 0 : index
    %20 = vector.load %arg7[%c0_15, %c0_16] : memref<1x128xf32, #tpu.memory_space<vmem>>, vector<1x128xf32>
    %21 = vector.broadcast %20 : vector<1x128xf32> to vector<256x128xf32>
    %22 = arith.addf %19, %21 : vector<256x128xf32>
    %cst_17 = arith.constant 0.000000e+00 : f32
    %23 = vector.broadcast %cst_17 : f32 to vector<256x128xf32>
    %24 = arith.maximumf %22, %23 : vector<256x128xf32>
    %c0_18 = arith.constant 0 : index
    %c0_19 = arith.constant 0 : index
    %25 = vector.load %arg8[%c0_18, %c0_19] : memref<128x128xf32, #tpu.memory_space<vmem>>, vector<128x128xf32>
    %cst_20 = arith.constant dense<0.000000e+00> : vector<256x128xf32>
    %26 = tpu.matmul %24, %25, %cst_20 {dimension_numbers = #tpu.dot_dimension_numbers<[1], [0], [0], [1], [0, 0, 1, 1], [], []>} : vector<256x128xf32>, vector<128x128xf32>, vector<256x128xf32> -> vector<256x128xf32>
    %c0_21 = arith.constant 0 : index
    %c0_22 = arith.constant 0 : index
    %27 = vector.load %arg9[%c0_21, %c0_22] : memref<1x128xf32, #tpu.memory_space<vmem>>, vector<1x128xf32>
    %28 = vector.broadcast %27 : vector<1x128xf32> to vector<256x128xf32>
    %29 = arith.addf %26, %28 : vector<256x128xf32>
    %cst_23 = arith.constant dense<0xFF800000> : vector<256xf32>
    %30 = vector.multi_reduction <maximumf>, %29, %cst_23 [1] : vector<256x128xf32> to vector<256xf32>
    %31 = vector.shape_cast %30 : vector<256xf32> to vector<256x1xf32>
    %32 = vector.broadcast %31 : vector<256x1xf32> to vector<256x128xf32>
    %33 = arith.subf %29, %32 : vector<256x128xf32>
    %34 = math.exp %33 : vector<256x128xf32>
    %cst_24 = arith.constant dense<0.000000e+00> : vector<256xf32>
    %35 = vector.multi_reduction <add>, %34, %cst_24 [1] : vector<256x128xf32> to vector<256xf32>
    %36 = vector.shape_cast %35 : vector<256xf32> to vector<256x1xf32>
    %37 = math.log %36 : vector<256x1xf32>
    %38 = vector.broadcast %37 : vector<256x1xf32> to vector<256x128xf32>
    %39 = arith.subf %33, %38 : vector<256x128xf32>
    %c0_25 = arith.constant 0 : index
    %c0_26 = arith.constant 0 : index
    %40 = vector.load %arg10[%c0_25, %c0_26] : memref<256x128xf32, #tpu.memory_space<vmem>>, vector<256x128xf32>
    tpu.vector_store %arg10[%c0_25, %c0_26], %39 {strides = array<i32>} : memref<256x128xf32, #tpu.memory_space<vmem>>, vector<256x128xf32>,
    return
  }
  func.func @transform_0(%arg0: i32) -> (i32, i32) {
    %c0_i32 = arith.constant 0 : i32
    %c0_i32_0 = arith.constant 0 : i32
    return %arg0, %c0_i32 : i32, i32
  }
  func.func @transform_1(%arg0: i32) -> (i32, i32) {
    %c0_i32 = arith.constant 0 : i32
    %c0_i32_0 = arith.constant 0 : i32
    %c0_i32_1 = arith.constant 0 : i32
    return %c0_i32, %c0_i32_0 : i32, i32
  }
  func.func @transform_2(%arg0: i32) -> (i32, i32) {
    %c0_i32 = arith.constant 0 : i32
    %c0_i32_0 = arith.constant 0 : i32
    %c0_i32_1 = arith.constant 0 : i32
    return %c0_i32, %c0_i32_0 : i32, i32
  }
  func.func @transform_3(%arg0: i32) -> (i32, i32) {
    %c0_i32 = arith.constant 0 : i32
    %c0_i32_0 = arith.constant 0 : i32
    %c0_i32_1 = arith.constant 0 : i32
    return %c0_i32, %c0_i32_0 : i32, i32
  }
  func.func @transform_4(%arg0: i32) -> (i32, i32) {
    %c0_i32 = arith.constant 0 : i32
    %c0_i32_0 = arith.constant 0 : i32
    %c0_i32_1 = arith.constant 0 : i32
    return %c0_i32, %c0_i32_0 : i32, i32
  }
  func.func @transform_5(%arg0: i32) -> (i32, i32) {
    %c0_i32 = arith.constant 0 : i32
    %c0_i32_0 = arith.constant 0 : i32
    %c0_i32_1 = arith.constant 0 : i32
    return %c0_i32, %c0_i32_0 : i32, i32
  }
  func.func @transform_6(%arg0: i32) -> (i32, i32) {
    %c0_i32 = arith.constant 0 : i32
    %c0_i32_0 = arith.constant 0 : i32
    %c0_i32_1 = arith.constant 0 : i32
    return %c0_i32, %c0_i32_0 : i32, i32
  }
  func.func @transform_7(%arg0: i32) -> (i32, i32) {
    %c0_i32 = arith.constant 0 : i32
    %c0_i32_0 = arith.constant 0 : i32
    %c0_i32_1 = arith.constant 0 : i32
    return %c0_i32, %c0_i32_0 : i32, i32
  }
  func.func @transform_8(%arg0: i32) -> (i32, i32) {
    %c0_i32 = arith.constant 0 : i32
    %c0_i32_0 = arith.constant 0 : i32
    %c0_i32_1 = arith.constant 0 : i32
    return %c0_i32, %c0_i32_0 : i32, i32
  }
  func.func @transform_9(%arg0: i32) -> (i32, i32) {
    %c0_i32 = arith.constant 0 : i32
    %c0_i32_0 = arith.constant 0 : i32
    return %arg0, %c0_i32 : i32, i32
  }
}

</mosaic_0001>

<bundles_post_ra>
// kernel: mlp_forward.1
= control target key start
LH: loop header
LB: loop body
LE: loop exit
PB: predicated region body
PF: predicated region fallthrough
CT: control target
= control target key end

     0   :  { %s2687_s30 = smov 0   ;;  %s3372_s0 = inlined_call_operand.vmem [shape: f32[512,256], index: 0, kind: input, shape index: {}]   ;;  %s3373_s1 = inlined_call_operand.vmem [shape: bf16[256,128], index: 1, kind: input, shape index: {}]   ;;  %s3374_s2 = inlined_call_operand.vmem [shape: f32[1,128], index: 2, kind: input, shape index: {}]   ;;  %s3375_s3 = inlined_call_operand.vmem [shape: bf16[128,128], index: 3, kind: input, shape index: {}]   ;;  %s3376_s4 = inlined_call_operand.vmem [shape: f32[1,128], index: 4, kind: input, shape index: {}]   ;;  %s3377_s5 = inlined_call_operand.vmem [shape: bf16[128,128], index: 5, kind: input, shape index: {}]   ;;  %s3378_s6 = inlined_call_operand.vmem [shape: f32[1,128], index: 6, kind: input, shape index: {}]   ;;  %s3379_s7 = inlined_call_operand.vmem [shape: f32[128,128], index: 7, kind: input, shape index: {}]   ;;  %s3380_s8 = inlined_call_operand.vmem [shape: f32[1,128], index: 8, kind: input, shape index: {}]   ;;  %s3381_s9 = inlined_call_operand.vmem [shape: f32[512,128], index: 9, kind: output, shape index: {}]  }
   0x1 LB: > { %s1980_s10 = sadd.s32 4294967295, %s2635_s30   ;;  %p1984_p0 = scmp.ge.s32.totalorder %s2635_s30, 1  ;;  %s2635_s30 = sphi %s2687_s30, %s19_s30  }
   0x2   : > { %p289_p1 = scmp.lt.s32.totalorder %s2635_s30, 3 }
   0x4   : > { %p290_p2 = pnand %p1984_p0, %p289_p1 }
   0x5   : > { %v2469_v0 = vld [vmem:[%s3373_s1 + $0x40] sm:$0xff] (!%p290_p2)   ;;  %s1985_s13 = sshll.u32 (!%p290_p2), %s1980_s10, 5  ;;  %v2471_v2 = vld [vmem:[%s3373_s1 + $0x48] sm:$0xff] (!%p290_p2)   ;;  %v2473_v4 = vld [vmem:[%s3373_s1 + $0x50] sm:$0xff] (!%p290_p2)  }
   0x6   : > { %293 = sbr.rel (%p290_p2) target bundleno = 1340 (0x53c), region = 56  ;;  %v2470_v1 = vld [vmem:[%s3373_s1] sm:$0xff] (!%p290_p2)   ;;  %2029 = vmatprep.subr.bf16.mxu0 (!%p290_p2), %v2469_v0  ;;  %p327_p3 = scmp.lt.s32.totalorder (!%p290_p2), %s1985_s13, 63  ;;  %2445 = vmatprep.subr.bf16.mxu1 (!%p290_p2), %v2469_v0  ;;  %v2472_v3 = vld [vmem:[%s3373_s1 + $0x8] sm:$0xff] (!%p290_p2)   ;;  %v2474_v5 = vld [vmem:[%s3373_s1 + $0x10] sm:$0xff] (!%p290_p2)  }
   0x7   : > { %2030 = vmatpush3.bf16.msra.mxu0 (!%p290_p2), %v2470_v1  ;;  %2453 = vmatpush3.bf16.msra.mxu1 (!%p290_p2), %v2470_v1  ;;  %v2475_v6 = vld [vmem:[%s3373_s1 + $0x58] sm:$0xff] (!%p290_p2)   ;;  %v2477_v8 = vld [vmem:[%s3373_s1 + $0x60] sm:$0xff] (!%p290_p2)   ;;  %v2479_v10 = vld [vmem:[%s3373_s1 + $0x68] sm:$0xff] (!%p290_p2)  }
   0x8   : > { %2031 = vmatprep.subr.bf16.mxu0 (!%p290_p2), %v2471_v2  ;;  %2446 = vmatprep.subr.bf16.mxu1 (!%p290_p2), %v2471_v2  ;;  %v2476_v7 = vld [vmem:[%s3373_s1 + $0x18] sm:$0xff] (!%p290_p2)   ;;  %v2478_v9 = vld [vmem:[%s3373_s1 + $0x20] sm:$0xff] (!%p290_p2)   ;;  %v2480_v14 = vld [vmem:[%s3373_s1 + $0x28] sm:$0xff] (!%p290_p2)  }
   0x9   : > { %v2481_v15 = vld [vmem:[%s3373_s1 + $0x70] sm:$0xff] (!%p290_p2)   ;;  %v2483_v17 = vld [vmem:[%s3373_s1 + $0x78] sm:$0xff] (!%p290_p2)   ;;  %v2485_v43 = vld [vmem:[%s3375_s3] sm:$0xff] (!%p290_p2)  }
   0xa   : > { %v2482_v16 = vld [vmem:[%s3373_s1 + $0x30] sm:$0xff] (!%p290_p2)   ;;  %v2484_v18 = vld [vmem:[%s3373_s1 + $0x38] sm:$0xff] (!%p290_p2)   ;;  %v2486_v46 = vld [vmem:[%s3375_s3 + $0x8] sm:$0xff] (!%p290_p2)  }
   0xb   : > { %2032 = vmatpush3.bf16.msra.mxu0 (!%p290_p2), %v2472_v3  ;;  %2454 = vmatpush3.bf16.msra.mxu1 (!%p290_p2), %v2472_v3  ;;  %v2487_v48 = vld [vmem:[%s3375_s3 + $0x10] sm:$0xff] (!%p290_p2)  }
   0xc   : > { %2033 = vmatprep.subr.bf16.mxu0 (!%p290_p2), %v2473_v4  ;;  %2447 = vmatprep.subr.bf16.mxu1 (!%p290_p2), %v2473_v4 }
   0xd   : > { %s3383_s13 = smov (!%p327_p3, %s1985_s13), 63 }
   0xe   : > { %s2028_s26 = sshll.u32 %s3383_s13, 4  ;;  %s1989_s25 = sshll.u32 %s3383_s13, 3 }
   0xf   : > { %2034 = vmatpush3.bf16.msra.mxu0 %v2474_v5  ;;  %2455 = vmatpush3.bf16.msra.mxu1 %v2474_v5  ;;  %s2728_s14 = scalar_lea.vmem %s3372_s0, %s2028_s26  ;;  %s3303_s28 = scalar_lea.vmem %s3381_s9, %s1989_s25 }
  0x10   : > { %2035 = vmatprep.subr.bf16.mxu0 %v2475_v6  ;;  %2448 = vmatprep.subr.bf16.mxu1 %v2475_v6  ;;  %v341_v11 = vld [vmem:[%s2728_s14 + $0x8] sm:$0xff]  ;;  %v343_v12 = vld [vmem:[%s2728_s14 + $0x18] sm:$0xff]  ;;  %v340_v19 = vld [vmem:[%s2728_s14] sm:$0xff] }
  0x11   : > { %v405_v13 = vpack.c.bf16 %v343_v12, %v341_v11  ;;  %v342_v20 = vld [vmem:[%s2728_s14 + $0x10] sm:$0xff]  ;;  %v345_v21 = vld [vmem:[%s2728_s14 + $0x28] sm:$0xff]  ;;  %v347_v22 = vld [vmem:[%s2728_s14 + $0x38] sm:$0xff] }
  0x12   : > { %v389_v23 = vld [vmem:[%s2728_s14 + $0x188] sm:$0xff]  ;;  %v391_v24 = vld [vmem:[%s2728_s14 + $0x198] sm:$0xff]  ;;  %v404_v25 = vpack.c.bf16 %v342_v20, %v340_v19  ;;  %v388_v27 = vld [vmem:[%s2728_s14 + $0x180] sm:$0xff]  ;;  %v407_v29 = vpack.c.bf16 %v347_v22, %v345_v21 }
  0x13   : > { %2036 = vmatpush3.bf16.msra.mxu0 %v2476_v7  ;;  %2456 = vmatpush3.bf16.msra.mxu1 %v2476_v7  ;;  %v429_v26 = vpack.c.bf16 %v391_v24, %v389_v23  ;;  %v390_v28 = vld [vmem:[%s2728_s14 + $0x190] sm:$0xff]  ;;  %v393_v31 = vld [vmem:[%s2728_s14 + $0x1a8] sm:$0xff]  ;;  %v395_v32 = vld [vmem:[%s2728_s14 + $0x1b8] sm:$0xff] }
  0x14   : > { %2037 = vmatprep.subr.bf16.mxu0 %v2477_v8  ;;  %2449 = vmatprep.subr.bf16.mxu1 %v2477_v8  ;;  %v428_v30 = vpack.c.bf16 %v390_v28, %v388_v27  ;;  %v431_v33 = vpack.c.bf16 %v395_v32, %v393_v31  ;;  %v344_v34 = vld [vmem:[%s2728_s14 + $0x20] sm:$0xff]  ;;  %v346_v35 = vld [vmem:[%s2728_s14 + $0x30] sm:$0xff]  ;;  %v349_v36 = vld [vmem:[%s2728_s14 + $0x48] sm:$0xff] }
  0x15   : > { %603 = vmatprep.mubr.bf16.mxu0 %v405_v13  ;;  %699 = vmatprep.mubr.bf16.mxu1 %v429_v26  ;;  %v351_v37 = vld [vmem:[%s2728_s14 + $0x58] sm:$0xff]  ;;  %v392_v38 = vld [vmem:[%s2728_s14 + $0x1a0] sm:$0xff]  ;;  %v394_v39 = vld [vmem:[%s2728_s14 + $0x1b0] sm:$0xff]  ;;  %v406_v42 = vpack.c.bf16 %v346_v35, %v344_v34 }
  0x16   : > { %v397_v40 = vld [vmem:[%s2728_s14 + $0x1c8] sm:$0xff]  ;;  %v399_v41 = vld [vmem:[%s2728_s14 + $0x1d8] sm:$0xff]  ;;  %v409_v44 = vpack.c.bf16 %v351_v37, %v349_v36  ;;  %v430_v45 = vpack.c.bf16 %v394_v39, %v392_v38  ;;  %v348_v49 = vld [vmem:[%s2728_s14 + $0x40] sm:$0xff] }
  0x17   : > { %2038 = vmatpush3.bf16.msra.mxu0 %v2478_v9  ;;  %2457 = vmatpush3.bf16.msra.mxu1 %v2478_v9  ;;  %v433_v47 = vpack.c.bf16 %v399_v41, %v397_v40  ;;  %v350_v50 = vld [vmem:[%s2728_s14 + $0x50] sm:$0xff]  ;;  %v353_v51 = vld [vmem:[%s2728_s14 + $0x68] sm:$0xff]  ;;  %v355_v52 = vld [vmem:[%s2728_s14 + $0x78] sm:$0xff] }
  0x18   : > { %2039 = vmatprep.subr.bf16.mxu0 %v2479_v10  ;;  %2450 = vmatprep.subr.bf16.mxu1 %v2479_v10  ;;  %v396_v53 = vld [vmem:[%s2728_s14 + $0x1c0] sm:$0xff]  ;;  %v398_v54 = vld [vmem:[%s2728_s14 + $0x1d0] sm:$0xff]  ;;  %v401_v55 = vld [vmem:[%s2728_s14 + $0x1e8] sm:$0xff]  ;;  %v408_v57 = vpack.c.bf16 %v350_v50, %v348_v49  ;;  %v411_v58 = vpack.c.bf16 %v355_v52, %v353_v51 }
  0x19   : > { %v403_v56 = vld [vmem:[%s2728_s14 + $0x1f8] sm:$0xff]  ;;  %v432_v59 = vpack.c.bf16 %v398_v54, %v396_v53  ;;  %v352_v61 = vld [vmem:[%s2728_s14 + $0x60] sm:$0xff]  ;;  %v354_v62 = vld [vmem:[%s2728_s14 + $0x70] sm:$0xff] }
  0x1a   : > { %v435_v60 = vpack.c.bf16 %v403_v56, %v401_v55  ;;  %v357_v63 = vld [vmem:[%s2728_s14 + $0x88] sm:$0xff]  ;;  %v359_v0 = vld [vmem:[%s2728_s14 + $0x98] sm:$0xff]  ;;  %v400_v1 = vld [vmem:[%s2728_s14 + $0x1e0] sm:$0xff]  ;;  %v410_v3 = vpack.c.bf16 %v354_v62, %v352_v61 }
  0x1b   : > { %2040 = vmatpush3.bf16.msra.mxu0 %v2480_v14  ;;  %2458 = vmatpush3.bf16.msra.mxu1 %v2480_v14  ;;  %v402_v2 = vld [vmem:[%s2728_s14 + $0x1f0] sm:$0xff]  ;;  %v413_v4 = vpack.c.bf16 %v359_v0, %v357_v63  ;;  %v356_v6 = vld [vmem:[%s2728_s14 + $0x80] sm:$0xff]  ;;  %v361_v8 = vld [vmem:[%s2728_s14 + $0xa8] sm:$0xff] }
  0x1c   : > { %2041 = vmatprep.subr.bf16.mxu0 %v2481_v15  ;;  %2451 = vmatprep.subr.bf16.mxu1 %v2481_v15  ;;  %v434_v5 = vpack.c.bf16 %v402_v2, %v400_v1  ;;  %v358_v7 = vld [vmem:[%s2728_s14 + $0x90] sm:$0xff]  ;;  %v363_v9 = vld [vmem:[%s2728_s14 + $0xb8] sm:$0xff]  ;;  %v360_v12 = vld [vmem:[%s2728_s14 + $0xa0] sm:$0xff] }
  0x1d   : > { %v412_v10 = vpack.c.bf16 %v358_v7, %v356_v6  ;;  %v415_v11 = vpack.c.bf16 %v363_v9, %v361_v8  ;;  %v362_v13 = vld [vmem:[%s2728_s14 + $0xb0] sm:$0xff]  ;;  %v365_v14 = vld [vmem:[%s2728_s14 + $0xc8] sm:$0xff]  ;;  %v367_v15 = vld [vmem:[%s2728_s14 + $0xd8] sm:$0xff] }
  0x1e   : > { %v366_v19 = vld [vmem:[%s2728_s14 + $0xd0] sm:$0xff]  ;;  %v369_v20 = vld [vmem:[%s2728_s14 + $0xe8] sm:$0xff]  ;;  %v371_v21 = vld [vmem:[%s2728_s14 + $0xf8] sm:$0xff] }
  0x1f   : > { %2042 = vmatpush3.bf16.msra.mxu0 %v2482_v16  ;;  %2459 = vmatpush3.bf16.msra.mxu1 %v2482_v16  ;;  %v414_v16 = vpack.c.bf16 %v362_v13, %v360_v12  ;;  %v419_v23 = vpack.c.bf16 %v371_v21, %v369_v20  ;;  %v368_v24 = vld [vmem:[%s2728_s14 + $0xe0] sm:$0xff]  ;;  %v373_v26 = vld [vmem:[%s2728_s14 + $0x108] sm:$0xff]  ;;  %v375_v27 = vld [vmem:[%s2728_s14 + $0x118] sm:$0xff] }
  0x20   : > { %2043 = vmatprep.subr.bf16.mxu0 %v2483_v17  ;;  %2452 = vmatprep.subr.bf16.mxu1 %v2483_v17  ;;  %v417_v17 = vpack.c.bf16 %v367_v15, %v365_v14  ;;  %v374_v31 = vld [vmem:[%s2728_s14 + $0x110] sm:$0xff]  ;;  %v377_v32 = vld [vmem:[%s2728_s14 + $0x128] sm:$0xff]  ;;  %v376_v36 = vld [vmem:[%s2728_s14 + $0x120] sm:$0xff] }
  0x21   : > { %v378_v37 = vld [vmem:[%s2728_s14 + $0x130] sm:$0xff]  ;;  %v381_v38 = vld [vmem:[%s2728_s14 + $0x148] sm:$0xff]  ;;  %v383_v39 = vld [vmem:[%s2728_s14 + $0x158] sm:$0xff] }
  0x22   : > { %v422_v40 = vpack.c.bf16 %v378_v37, %v376_v36  ;;  %v425_v41 = vpack.c.bf16 %v383_v39, %v381_v38  ;;  %v386_v49 = vld [vmem:[%s2728_s14 + $0x170] sm:$0xff]  ;;  %v2488_v50 = vld [vmem:[%s3375_s3 + $0x18] sm:$0xff]   ;;  %v2489_v52 = vld [vmem:[%s3375_s3 + $0x20] sm:$0xff]  }
  0x23   : > { %2044 = vmatpush3.bf16.msra.mxu0 %v2484_v18  ;;  %2460 = vmatpush3.bf16.msra.mxu1 %v2484_v18  ;;  %v364_v18 = vld [vmem:[%s2728_s14 + $0xc0] sm:$0xff]  ;;  %v2490_v53 = vld [vmem:[%s3375_s3 + $0x28] sm:$0xff]   ;;  %v2491_v54 = vld [vmem:[%s3375_s3 + $0x30] sm:$0xff]  }
  0x24   : > { %2237 = vmatprep.subr.bf16.mxu1 %v2485_v43  ;;  %v416_v22 = vpack.c.bf16 %v366_v19, %v364_v18  ;;  %v2492_v55 = vld [vmem:[%s3375_s3 + $0x38] sm:$0xff]   ;;  %v2842_v56 = vld [vmem:[%s3377_s5] sm:$0xff]  }
  0x26   : > { %604 = vmatmul.mubr.bf16.vlgmr.msra.gmra.mrb[0].mxu0 %v404_v25  ;;  %700 = vmatmul.mubr.bf16.vlgmr.msra.gmra.mrb[0].mxu1 %v428_v30  ;;  %v370_v25 = vld [vmem:[%s2728_s14 + $0xf0] sm:$0xff]  ;;  %v372_v30 = vld [vmem:[%s2728_s14 + $0x100] sm:$0xff] }
  0x27   : > { %611 = vmatprep.mubr.bf16.mxu0 %v407_v29  ;;  %707 = vmatprep.mubr.bf16.mxu1 %v431_v33  ;;  %v418_v28 = vpack.c.bf16 %v370_v25, %v368_v24  ;;  %v421_v29 = vpack.c.bf16 %v375_v27, %v373_v26  ;;  %v379_v33 = vld [vmem:[%s2728_s14 + $0x138] sm:$0xff]  ;;  %v420_v34 = vpack.c.bf16 %v374_v31, %v372_v30 }
  0x28   : > { %2238 = vmatpush3.bf16.msra.mxu1 %v2485_v43  ;;  %v423_v35 = vpack.c.bf16 %v379_v33, %v377_v32  ;;  %v382_v43 = vld [vmem:[%s2728_s14 + $0x150] sm:$0xff] }
  0x29   : > { %2239 = vmatprep.subr.bf16.mxu1 %v2486_v46 }
  0x2c   : > { %2240 = vmatpush3.bf16.msra.mxu1 %v2486_v46 }
  0x2d   : > { %2241 = vmatprep.subr.bf16.mxu1 %v2487_v48 }
  0x2e   : > { %612 = vmatmul.mubr.bf16.gmra.mrb[4].mxu0 %v406_v42  ;;  %708 = vmatmul.mubr.bf16.gmra.mrb[4].mxu1 %v430_v45  ;;  %v380_v42 = vld [vmem:[%s2728_s14 + $0x140] sm:$0xff]  ;;  %v387_v45 = vld [vmem:[%s2728_s14 + $0x178] sm:$0xff] }
  0x2f   : > { %619 = vmatprep.mubr.bf16.mxu0 %v409_v44  ;;  %715 = vmatprep.mubr.bf16.mxu1 %v433_v47  ;;  %v385_v44 = vld [vmem:[%s2728_s14 + $0x168] sm:$0xff]  ;;  %v424_v46 = vpack.c.bf16 %v382_v43, %v380_v42 }
  0x30   : > { %2242 = vmatpush3.bf16.msra.mxu1 %v2487_v48  ;;  %v427_v47 = vpack.c.bf16 %v387_v45, %v385_v44  ;;  %v384_v48 = vld [vmem:[%s2728_s14 + $0x160] sm:$0xff]  ;;  %v2494_v43 = vld [vmem:[%s3377_s5 + $0x8] sm:$0xff]  }
  0x31   : > { %2243 = vmatprep.subr.bf16.mxu1 %v2488_v50  ;;  %v426_v51 = vpack.c.bf16 %v386_v49, %v384_v48 }
  0x34   : > { %2244 = vmatpush3.bf16.msra.mxu1 %v2488_v50 }
  0x35   : > { %2245 = vmatprep.subr.bf16.mxu1 %v2489_v52 }
  0x36   : > { %620 = vmatmul.mubr.bf16.gmra.mrb[8].mxu0 %v408_v57  ;;  %716 = vmatmul.mubr.bf16.gmra.mrb[8].mxu1 %v432_v59 }
  0x37   : > { %627 = vmatprep.mubr.bf16.mxu0 %v411_v58  ;;  %723 = vmatprep.mubr.bf16.mxu1 %v435_v60  ;;  %v2848_v58 = vld [vmem:[%s3374_s2] ss:$0 sm:$0xff] }
  0x38   : > { %2246 = vmatpush3.bf16.msra.mxu1 %v2489_v52 }
  0x39   : > { %2247 = vmatprep.subr.bf16.mxu1 %v2490_v53 }
  0x3c   : > { %2248 = vmatpush3.bf16.msra.mxu1 %v2490_v53 }
  0x3d   : > { %2249 = vmatprep.subr.bf16.mxu1 %v2491_v54 }
  0x3e   : > { %628 = vmatmul.mubr.bf16.gmra.mrb[12].mxu0 %v410_v3  ;;  %724 = vmatmul.mubr.bf16.gmra.mrb[12].mxu1 %v434_v5 }
  0x3f   : > { %635 = vmatprep.mubr.bf16.mxu0 %v413_v4 }
  0x40   : > { %2250 = vmatpush3.bf16.msra.mxu1 %v2491_v54  ;;  %v2495_v54 = vld [vmem:[%s3377_s5 + $0x10] sm:$0xff]  }
  0x41   : > { %2251 = vmatprep.subr.bf16.mxu1 %v2492_v55 }
  0x44   : > { %2252 = vmatpush3.bf16.msra.mxu1 %v2492_v55 }
  0x45   : > { %2285 = vmatprep.subr.bf16.mxu1 %v2842_v56 }
  0x46   : > { %636 = vmatmul.mubr.bf16.gmra.mrb[16].mxu0 %v412_v10 }
  0x47   : > { %643 = vmatprep.mubr.bf16.mxu0 %v415_v11 }
  0x4e   : > { %644 = vmatmul.mubr.bf16.gmra.mrb[20].mxu0 %v414_v16 }
  0x4f   : > { %651 = vmatprep.mubr.bf16.mxu0 %v417_v17 }
  0x56   : > { %652 = vmatmul.mubr.bf16.gmra.mrb[24].mxu0 %v416_v22 }
  0x57   : > { %659 = vmatprep.mubr.bf16.mxu0 %v419_v23 }
  0x5e   : > { %660 = vmatmul.mubr.bf16.gmra.mrb[28].mxu0 %v418_v28 }
  0x5f   : > { %667 = vmatprep.mubr.bf16.mxu0 %v421_v29 }
  0x66   : > { %668 = vmatmul.mubr.bf16.gmra.mrb[32].mxu0 %v420_v34 }
  0x67   : > { %675 = vmatprep.mubr.bf16.mxu0 %v423_v35 }
  0x6e   : > { %676 = vmatmul.mubr.bf16.gmra.mrb[36].mxu0 %v422_v40 }
  0x6f   : > { %683 = vmatprep.mubr.bf16.mxu0 %v425_v41 }
  0x76   : > { %684 = vmatmul.mubr.bf16.gmra.mrb[40].mxu0 %v424_v46 }
  0x77   : > { %691 = vmatprep.mubr.bf16.mxu0 %v427_v47 }
  0x7e   : > { %692 = vmatmul.mubr.bf16.gmra.mrb[44].mxu0 %v426_v51 }
  0xf9   : > { %v2045_v57 = vpop.f32.mrb[0].mxu0  ;;  %v2117_v60 = vpop.f32.mrb[0].mxu1 }
  0xfa   : > { %v2046_v59 = vpop.f32.mrb[1].mxu0  ;;  %v2118_v63 = vpop.f32.mrb[1].mxu1 }
  0xfb   : > { %v2047_v61 = vadd.f32 %v2046_v59, %v2045_v57  ;;  %v2048_v62 = vpop.f32.mrb[2].mxu0  ;;  %v2119_v1 = vadd.f32 %v2118_v63, %v2117_v60  ;;  %v2120_v2 = vpop.f32.mrb[2].mxu1 }
  0xfc   : > { %v2049_v0 = vpop.f32.mrb[3].mxu0  ;;  %v2121_v5 = vpop.f32.mrb[3].mxu1 }
  0xfd   : > { %v606_v3 = vadd.f32 %v2047_v61, %v2848_v58  ;;  %v2050_v4 = vadd.f32 %v2049_v0, %v2048_v62  ;;  %v702_v6 = vadd.f32 %v2119_v1, %v2848_v58  ;;  %v2122_v7 = vadd.f32 %v2121_v5, %v2120_v2 }
  0xff   : > { %v609_v8 = vadd.f32 %v2050_v4, %v2848_v58  ;;  %v756_v9 = vmax.f32 %v702_v6, 0.0  ;;  %v705_v10 = vadd.f32 %v2122_v7, %v2848_v58  ;;  %v732_v11 = vmax.f32 %v606_v3, 0.0  ;;  %v2496_v4 = vld [vmem:[%s3377_s5 + $0x18] sm:$0xff]  }
 0x101   : > { %v733_v12 = vmax.f32 %v609_v8, 0.0  ;;  %v2051_v13 = vpop.f32.mrb[4].mxu0  ;;  %v757_v15 = vmax.f32 %v705_v10, 0.0  ;;  %v2123_v16 = vpop.f32.mrb[4].mxu1 }
 0x102   : > { %v2052_v14 = vpop.f32.mrb[5].mxu0  ;;  %v2124_v20 = vpop.f32.mrb[5].mxu1 }
 0x103   : > { %v2053_v17 = vadd.f32 %v2052_v14, %v2051_v13  ;;  %v2054_v18 = vpop.f32.mrb[6].mxu0  ;;  %v764_v19 = vpack.c.bf16 %v733_v12, %v732_v11  ;;  %v2125_v22 = vadd.f32 %v2124_v20, %v2123_v16  ;;  %v2126_v23 = vpop.f32.mrb[6].mxu1  ;;  %v2854_v24 = vpack.c.bf16 %v757_v15, %v756_v9  ;;  %v2497_v15 = vld [vmem:[%s3377_s5 + $0x20] sm:$0xff]  }
 0x104   : > { %v2055_v21 = vpop.f32.mrb[7].mxu0  ;;  %v2127_v27 = vpop.f32.mrb[7].mxu1 }
 0x105   : > { %v614_v25 = vadd.f32 %v2053_v17, %v2848_v58  ;;  %v2056_v26 = vadd.f32 %v2055_v21, %v2054_v18  ;;  %2253 = vmatprep.mubr.bf16.mxu1 %v764_v19  ;;  %v710_v28 = vadd.f32 %v2125_v22, %v2848_v58  ;;  %v2128_v29 = vadd.f32 %v2127_v27, %v2126_v23  ;;  %v2498_v27 = vld [vmem:[%s3377_s5 + $0x28] sm:$0xff]  }
 0x107   : > { %v617_v30 = vadd.f32 %v2056_v26, %v2848_v58  ;;  %v758_v31 = vmax.f32 %v710_v28, 0.0  ;;  %v713_v32 = vadd.f32 %v2128_v29, %v2848_v58  ;;  %v734_v33 = vmax.f32 %v614_v25, 0.0 }
 0x109   : > { %v735_v34 = vmax.f32 %v617_v30, 0.0  ;;  %v2057_v35 = vpop.f32.mrb[8].mxu0  ;;  %v759_v37 = vmax.f32 %v713_v32, 0.0  ;;  %v2129_v38 = vpop.f32.mrb[8].mxu1 }
 0x10a   : > { %v2058_v36 = vpop.f32.mrb[9].mxu0  ;;  %v2130_v42 = vpop.f32.mrb[9].mxu1 }
 0x10b   : > { %v765_v39 = vpack.c.bf16 %v735_v34, %v734_v33  ;;  %v2059_v40 = vadd.f32 %v2058_v36, %v2057_v35  ;;  %v2060_v41 = vpop.f32.mrb[10].mxu0  ;;  %v2131_v45 = vadd.f32 %v2130_v42, %v2129_v38  ;;  %v2132_v46 = vpop.f32.mrb[10].mxu1  ;;  %v2863_v47 = vpack.c.bf16 %v759_v37, %v758_v31 }
 0x10c   : > { %v2061_v44 = vpop.f32.mrb[11].mxu0  ;;  %v2133_v50 = vpop.f32.mrb[11].mxu1 }
 0x10d   : > { %v622_v48 = vadd.f32 %v2059_v40, %v2848_v58  ;;  %v2062_v49 = vadd.f32 %v2061_v44, %v2060_v41  ;;  %2254 = vmatmul.mubr.bf16.vlgmr.msra.gmra.mrb[16].mxu1 %v765_v39  ;;  %v718_v51 = vadd.f32 %v2131_v45, %v2848_v58  ;;  %v2134_v52 = vadd.f32 %v2133_v50, %v2132_v46 }
 0x10e   : > { %2286 = vmatpush3.bf16.msra.mxu1 %v2842_v56 }
 0x10f   : > { %v625_v53 = vadd.f32 %v2062_v49, %v2848_v58  ;;  %2287 = vmatprep.subr.bf16.mxu1 %v2494_v43  ;;  %v760_v55 = vmax.f32 %v718_v51, 0.0  ;;  %v721_v57 = vadd.f32 %v2134_v52, %v2848_v58  ;;  %v736_v59 = vmax.f32 %v622_v48, 0.0 }
 0x111   : > { %v737_v60 = vmax.f32 %v625_v53, 0.0  ;;  %v2063_v61 = vpop.f32.mrb[12].mxu0  ;;  %v761_v63 = vmax.f32 %v721_v57, 0.0  ;;  %v2135_v0 = vpop.f32.mrb[12].mxu1 }
 0x112   : > { %v2064_v62 = vpop.f32.mrb[13].mxu0  ;;  %2288 = vmatpush3.bf16.msra.mxu1 %v2494_v43  ;;  %v2136_v3 = vpop.f32.mrb[13].mxu1 }
 0x113   : > { %v2065_v1 = vadd.f32 %v2064_v62, %v2063_v61  ;;  %v2066_v2 = vpop.f32.mrb[14].mxu0  ;;  %v766_v56 = vpack.c.bf16 %v737_v60, %v736_v59  ;;  %2289 = vmatprep.subr.bf16.mxu1 %v2495_v54  ;;  %v2137_v6 = vadd.f32 %v2136_v3, %v2135_v0  ;;  %v2138_v7 = vpop.f32.mrb[14].mxu1  ;;  %v2876_v8 = vpack.c.bf16 %v761_v63, %v760_v55 }
 0x114   : > { %v2067_v5 = vpop.f32.mrb[15].mxu0  ;;  %v2139_v11 = vpop.f32.mrb[15].mxu1 }
 0x115   : > { %v630_v9 = vadd.f32 %v2065_v1, %v2848_v58  ;;  %v2068_v10 = vadd.f32 %v2067_v5, %v2066_v2  ;;  %2257 = vmatprep.mubr.bf16.mxu1 %v766_v56  ;;  %v726_v12 = vadd.f32 %v2137_v6, %v2848_v58  ;;  %v2140_v13 = vadd.f32 %v2139_v11, %v2138_v7 }
 0x116   : > { %2290 = vmatpush3.bf16.msra.mxu1 %v2495_v54 }
 0x117   : > { %v633_v14 = vadd.f32 %v2068_v10, %v2848_v58  ;;  %2291 = vmatprep.subr.bf16.mxu1 %v2496_v4  ;;  %v762_v16 = vmax.f32 %v726_v12, 0.0  ;;  %v729_v17 = vadd.f32 %v2140_v13, %v2848_v58  ;;  %v738_v18 = vmax.f32 %v630_v9, 0.0 }
 0x119   : > { %v739_v19 = vmax.f32 %v633_v14, 0.0  ;;  %v2069_v20 = vpop.f32.mrb[16].mxu0  ;;  %v763_v22 = vmax.f32 %v729_v17, 0.0 }
 0x11a   : > { %v2070_v21 = vpop.f32.mrb[17].mxu0  ;;  %2292 = vmatpush3.bf16.msra.mxu1 %v2496_v4 }
 0x11b   : > { %v2071_v23 = vadd.f32 %v2070_v21, %v2069_v20  ;;  %v2072_v25 = vpop.f32.mrb[18].mxu0  ;;  %v767_v26 = vpack.c.bf16 %v739_v19, %v738_v18  ;;  %2293 = vmatprep.subr.bf16.mxu1 %v2497_v15  ;;  %v2888_v29 = vpack.c.bf16 %v763_v22, %v762_v16 }
 0x11c   : > { %v2073_v28 = vpop.f32.mrb[19].mxu0 }
 0x11d   : > { %v638_v30 = vadd.f32 %v2071_v23, %v2848_v58  ;;  %v2074_v31 = vadd.f32 %v2073_v28, %v2072_v25  ;;  %2258 = vmatmul.mubr.bf16.gmra.mrb[20].mxu1 %v767_v26 }
 0x11e   : > { %2294 = vmatpush3.bf16.msra.mxu1 %v2497_v15 }
 0x11f   : > { %v641_v32 = vadd.f32 %v2074_v31, %v2848_v58  ;;  %2295 = vmatprep.subr.bf16.mxu1 %v2498_v27  ;;  %v740_v33 = vmax.f32 %v638_v30, 0.0 }
 0x121   : > { %v741_v34 = vmax.f32 %v641_v32, 0.0  ;;  %v2075_v35 = vpop.f32.mrb[20].mxu0 }
 0x122   : > { %v2076_v36 = vpop.f32.mrb[21].mxu0  ;;  %2296 = vmatpush3.bf16.msra.mxu1 %v2498_v27 }
 0x123   : > { %v2077_v37 = vadd.f32 %v2076_v36, %v2075_v35  ;;  %v2078_v38 = vpop.f32.mrb[22].mxu0  ;;  %v768_v39 = vpack.c.bf16 %v741_v34, %v740_v33 }
 0x124   : > { %v2079_v40 = vpop.f32.mrb[23].mxu0 }
 0x125   : > { %v646_v41 = vadd.f32 %v2077_v37, %v2848_v58  ;;  %v2080_v42 = vadd.f32 %v2079_v40, %v2078_v38  ;;  %2261 = vmatprep.mubr.bf16.mxu1 %v768_v39 }
 0x127   : > { %v649_v43 = vadd.f32 %v2080_v42, %v2848_v58  ;;  %v742_v44 = vmax.f32 %v646_v41, 0.0 }
 0x129   : > { %v743_v45 = vmax.f32 %v649_v43, 0.0  ;;  %v2081_v46 = vpop.f32.mrb[24].mxu0 }
 0x12a   : > { %v2082_v48 = vpop.f32.mrb[25].mxu0 }
 0x12b   : > { %v2083_v49 = vadd.f32 %v2082_v48, %v2081_v46  ;;  %v2084_v50 = vpop.f32.mrb[26].mxu0  ;;  %v769_v51 = vpack.c.bf16 %v743_v45, %v742_v44 }
 0x12c   : > { %v2085_v52 = vpop.f32.mrb[27].mxu0 }
 0x12d   : > { %v654_v53 = vadd.f32 %v2083_v49, %v2848_v58  ;;  %v2086_v54 = vadd.f32 %v2085_v52, %v2084_v50  ;;  %2262 = vmatmul.mubr.bf16.gmra.mrb[24].mxu1 %v769_v51 }
 0x12f   : > { %v657_v55 = vadd.f32 %v2086_v54, %v2848_v58  ;;  %v744_v57 = vmax.f32 %v654_v53, 0.0 }
 0x131   : > { %v745_v59 = vmax.f32 %v657_v55, 0.0  ;;  %v2087_v60 = vpop.f32.mrb[28].mxu0  ;;  %v2499_v55 = vld [vmem:[%s3377_s5 + $0x30] sm:$0xff]  }
 0x132   : > { %v2088_v61 = vpop.f32.mrb[29].mxu0  ;;  %2297 = vmatprep.subr.bf16.mxu1 %v2499_v55 }
 0x133   : > { %v2089_v62 = vadd.f32 %v2088_v61, %v2087_v60  ;;  %v2090_v63 = vpop.f32.mrb[30].mxu0  ;;  %v770_v0 = vpack.c.bf16 %v745_v59, %v744_v57  ;;  %2298 = vmatpush3.bf16.msra.mxu1 %v2499_v55  ;;  %v2500_v57 = vld [vmem:[%s3377_s5 + $0x38] sm:$0xff]   ;;  %v1329_v61 = vld [vmem:[%s3379_s7 + $0x28] sm:$0xff] }
 0x134   : > { %v2091_v1 = vpop.f32.mrb[31].mxu0  ;;  %2299 = vmatprep.subr.bf16.mxu1 %v2500_v57 }
 0x135   : > { %v662_v2 = vadd.f32 %v2089_v62, %v2848_v58  ;;  %v2092_v56 = vadd.f32 %v2091_v1, %v2090_v63  ;;  %2265 = vmatprep.mubr.bf16.mxu1 %v770_v0  ;;  %v1330_v63 = vld [vmem:[%s3379_s7 + $0x30] sm:$0xff]  ;;  %v1331_v0 = vld [vmem:[%s3379_s7 + $0x38] sm:$0xff] }
 0x136   : > { %v2425_v1 = vpack.c.bf16 %v1331_v0, %v1330_v63 }
 0x137   : > { %v665_v3 = vadd.f32 %v2092_v56, %v2848_v58  ;;  %v746_v4 = vmax.f32 %v662_v2, 0.0  ;;  %2300 = vmatpush3.bf16.msra.mxu1 %v2500_v57  ;;  %v1332_v2 = vld [vmem:[%s3379_s7 + $0x40] sm:$0xff]  ;;  %v1333_v56 = vld [vmem:[%s3379_s7 + $0x48] sm:$0xff] }
 0x139   : > { %v747_v5 = vmax.f32 %v665_v3, 0.0  ;;  %v2093_v6 = vpop.f32.mrb[32].mxu0  ;;  %v2429_v3 = vpack.c.bf16 %v1333_v56, %v1332_v2 }
 0x13a   : > { %v2094_v7 = vpop.f32.mrb[33].mxu0 }
 0x13b   : > { %v2095_v9 = vadd.f32 %v2094_v7, %v2093_v6  ;;  %v2096_v10 = vpop.f32.mrb[34].mxu0  ;;  %v771_v11 = vpack.c.bf16 %v747_v5, %v746_v4  ;;  %v1334_v4 = vld [vmem:[%s3379_s7 + $0x50] sm:$0xff]  ;;  %v1335_v5 = vld [vmem:[%s3379_s7 + $0x58] sm:$0xff]  ;;  %v2955_v7 = vld [vmem:[%s3376_s4] ss:$0 sm:$0xff] }
 0x13c   : > { %v2097_v12 = vpop.f32.mrb[35].mxu0  ;;  %v2433_v6 = vpack.c.bf16 %v1335_v5, %v1334_v4 }
 0x13d   : > { %v670_v13 = vadd.f32 %v2095_v9, %v2848_v58  ;;  %v2098_v14 = vadd.f32 %v2097_v12, %v2096_v10  ;;  %2266 = vmatmul.mubr.bf16.gmra.mrb[28].mxu1 %v771_v11 }
 0x13f   : > { %v673_v15 = vadd.f32 %v2098_v14, %v2848_v58  ;;  %v748_v16 = vmax.f32 %v670_v13, 0.0 }
 0x141   : > { %v749_v17 = vmax.f32 %v673_v15, 0.0  ;;  %v2099_v18 = vpop.f32.mrb[36].mxu0 }
 0x142   : > { %v2100_v19 = vpop.f32.mrb[37].mxu0 }
 0x143   : > { %v2101_v20 = vadd.f32 %v2100_v19, %v2099_v18  ;;  %v2102_v21 = vpop.f32.mrb[38].mxu0  ;;  %v772_v22 = vpack.c.bf16 %v749_v17, %v748_v16 }
 0x144   : > { %v2103_v23 = vpop.f32.mrb[39].mxu0 }
 0x145   : > { %v678_v25 = vadd.f32 %v2101_v20, %v2848_v58  ;;  %v2104_v26 = vadd.f32 %v2103_v23, %v2102_v21  ;;  %2269 = vmatprep.mubr.bf16.mxu1 %v772_v22 }
 0x147   : > { %v681_v27 = vadd.f32 %v2104_v26, %v2848_v58  ;;  %v750_v28 = vmax.f32 %v678_v25, 0.0 }
 0x149   : > { %v751_v30 = vmax.f32 %v681_v27, 0.0  ;;  %v2105_v31 = vpop.f32.mrb[40].mxu0 }
 0x14a   : > { %v2106_v32 = vpop.f32.mrb[41].mxu0 }
 0x14b   : > { %v2107_v33 = vadd.f32 %v2106_v32, %v2105_v31  ;;  %v2108_v34 = vpop.f32.mrb[42].mxu0  ;;  %v773_v35 = vpack.c.bf16 %v751_v30, %v750_v28 }
 0x14c   : > { %v2109_v36 = vpop.f32.mrb[43].mxu0 }
 0x14d   : > { %v686_v37 = vadd.f32 %v2107_v33, %v2848_v58  ;;  %v2110_v38 = vadd.f32 %v2109_v36, %v2108_v34  ;;  %2270 = vmatmul.mubr.bf16.gmra.mrb[32].mxu1 %v773_v35 }
 0x14f   : > { %v689_v39 = vadd.f32 %v2110_v38, %v2848_v58  ;;  %v752_v40 = vmax.f32 %v686_v37, 0.0 }
 0x151   : > { %v753_v41 = vmax.f32 %v689_v39, 0.0  ;;  %v2111_v42 = vpop.f32.mrb[44].mxu0 }
 0x152   : > { %v2112_v43 = vpop.f32.mrb[45].mxu0 }
 0x153   : > { %v2113_v44 = vadd.f32 %v2112_v43, %v2111_v42  ;;  %v2114_v45 = vpop.f32.mrb[46].mxu0  ;;  %v774_v46 = vpack.c.bf16 %v753_v41, %v752_v40 }
 0x154   : > { %v2115_v48 = vpop.f32.mrb[47].mxu0 }
 0x155   : > { %v694_v49 = vadd.f32 %v2113_v44, %v2848_v58  ;;  %v2116_v50 = vadd.f32 %v2115_v48, %v2114_v45  ;;  %2273 = vmatprep.mubr.bf16.mxu1 %v774_v46 }
 0x157   : > { %v697_v51 = vadd.f32 %v2116_v50, %v2848_v58  ;;  %v754_v52 = vmax.f32 %v694_v49, 0.0  ;;  %v1324_v58 = vld [vmem:[%s3379_s7] sm:$0xff] }
 0x159   : > { %v755_v53 = vmax.f32 %v697_v51, 0.0 }
 0x15b   : > { %v775_v54 = vpack.c.bf16 %v755_v53, %v754_v52 }
 0x15d   : > { %2274 = vmatmul.mubr.bf16.gmra.mrb[36].mxu1 %v775_v54 }
 0x15e   : > { %2277 = vmatprep.mubr.bf16.mxu1 %v2854_v24  ;;  %v1325_v24 = vld [vmem:[%s3379_s7 + $0x8] sm:$0xff] }
 0x15f   : > { %v2413_v59 = vpack.c.bf16 %v1325_v24, %v1324_v58 }
 0x161   : > { %2414 = vmatprep.subr.bf16.mxu0 %v2413_v59 }
 0x162   : > { %2416 = vmatpush3.bf16.msra.mxu0 %v2413_v59 }
 0x165   : > { %2278 = vmatmul.mubr.bf16.gmra.mrb[40].mxu1 %v2863_v47  ;;  %v1326_v47 = vld [vmem:[%s3379_s7 + $0x10] sm:$0xff] }
 0x166   : > { %2281 = vmatprep.mubr.bf16.mxu1 %v2876_v8  ;;  %v1327_v8 = vld [vmem:[%s3379_s7 + $0x18] sm:$0xff] }
 0x167   : > { %v2417_v60 = vpack.c.bf16 %v1327_v8, %v1326_v47 }
 0x169   : > { %2418 = vmatprep.subr.bf16.mxu0 %v2417_v60 }
 0x16a   : > { %2420 = vmatpush3.bf16.msra.mxu0 %v2417_v60 }
 0x16d   : > { %2282 = vmatmul.mubr.bf16.gmra.mrb[44].mxu1 %v2888_v29  ;;  %v1328_v29 = vld [vmem:[%s3379_s7 + $0x20] sm:$0xff] }
 0x16e   : > { %v2421_v62 = vpack.c.bf16 %v1329_v61, %v1328_v29 }
 0x170   : > { %2422 = vmatprep.subr.bf16.mxu0 %v2421_v62 }
 0x171   : > { %2424 = vmatpush3.bf16.msra.mxu0 %v2421_v62 }
 0x172   : > { %2426 = vmatprep.subr.bf16.mxu0 %v2425_v1 }
 0x175   : > { %2428 = vmatpush3.bf16.msra.mxu0 %v2425_v1 }
 0x176   : > { %2430 = vmatprep.subr.bf16.mxu0 %v2429_v3 }
 0x179   : > { %2432 = vmatpush3.bf16.msra.mxu0 %v2429_v3 }
 0x17a   : > { %2434 = vmatprep.subr.bf16.mxu0 %v2433_v6 }
 0x17d   : > { %2436 = vmatpush3.bf16.msra.mxu0 %v2433_v6 }
 0x1e0   : > { %v2255_v9 = vpop.f32.mrb[16].mxu1 }
 0x1e1   : > { %v894_v10 = vadd.f32 %v2255_v9, %v2955_v7  ;;  %v885_v11 = vpop.f32.mrb[17].mxu1 }
 0x1e2   : > { %v886_v12 = vadd.f32 %v2955_v7, %v885_v11  ;;  %v2256_v13 = vpop.f32.mrb[18].mxu1 }
 0x1e3   : > { %v897_v14 = vadd.f32 %v2256_v13, %v2955_v7  ;;  %v888_v15 = vpop.f32.mrb[19].mxu1  ;;  %v1014_v17 = vmax.f32 %v894_v10, 0.0 }
 0x1e4   : > { %v889_v16 = vadd.f32 %v2955_v7, %v888_v15  ;;  %v1012_v19 = vmax.f32 %v886_v12, 0.0 }
 0x1e5   : > { %v1015_v18 = vmax.f32 %v897_v14, 0.0 }
 0x1e6   : > { %v1013_v20 = vmax.f32 %v889_v16, 0.0 }
 0x1e7   : > { %v1045_v21 = vpack.c.bf16 %v1015_v18, %v1014_v17 }
 0x1e8   : > { %v1044_v22 = vpack.c.bf16 %v1013_v20, %v1012_v19 }
 0x1ea   : > { %2301 = vmatprep.mubr.bf16.mxu1 %v1044_v22 }
 0x1eb   : > { %2302 = vmatmul.mubr.bf16.vlgmr.msra.gmra.mrb[48].mxu1 %v1045_v21 }
 0x1f0   : > { %v2259_v23 = vpop.f32.mrb[20].mxu1 }
 0x1f1   : > { %v910_v25 = vadd.f32 %v2259_v23, %v2955_v7  ;;  %v901_v26 = vpop.f32.mrb[21].mxu1 }
 0x1f2   : > { %v902_v27 = vadd.f32 %v2955_v7, %v901_v26  ;;  %v2260_v28 = vpop.f32.mrb[22].mxu1 }
 0x1f3   : > { %v913_v30 = vadd.f32 %v2260_v28, %v2955_v7  ;;  %v904_v31 = vpop.f32.mrb[23].mxu1  ;;  %v1018_v33 = vmax.f32 %v910_v25, 0.0 }
 0x1f4   : > { %v905_v32 = vadd.f32 %v2955_v7, %v904_v31  ;;  %v1016_v35 = vmax.f32 %v902_v27, 0.0 }
 0x1f5   : > { %v1019_v34 = vmax.f32 %v913_v30, 0.0 }
 0x1f6   : > { %v1017_v36 = vmax.f32 %v905_v32, 0.0 }
 0x1f7   : > { %v1047_v37 = vpack.c.bf16 %v1019_v34, %v1018_v33 }
 0x1f8   : > { %v1046_v38 = vpack.c.bf16 %v1017_v36, %v1016_v35 }
 0x1fa   : > { %2305 = vmatprep.mubr.bf16.mxu1 %v1046_v38 }
 0x1fb   : > { %2306 = vmatmul.mubr.bf16.gmra.mrb[52].mxu1 %v1047_v37 }
 0x200   : > { %v2263_v39 = vpop.f32.mrb[24].mxu1 }
 0x201   : > { %v926_v40 = vadd.f32 %v2263_v39, %v2955_v7  ;;  %v917_v41 = vpop.f32.mrb[25].mxu1  ;;  %v1336_v39 = vld [vmem:[%s3379_s7 + $0x60] sm:$0xff] }
 0x202   : > { %v918_v42 = vadd.f32 %v2955_v7, %v917_v41  ;;  %v2264_v43 = vpop.f32.mrb[26].mxu1 }
 0x203   : > { %v929_v44 = vadd.f32 %v2264_v43, %v2955_v7  ;;  %v920_v45 = vpop.f32.mrb[27].mxu1  ;;  %v1022_v48 = vmax.f32 %v926_v40, 0.0  ;;  %v1337_v40 = vld [vmem:[%s3379_s7 + $0x68] sm:$0xff] }
 0x204   : > { %v921_v46 = vadd.f32 %v2955_v7, %v920_v45  ;;  %v1020_v50 = vmax.f32 %v918_v42, 0.0  ;;  %v2437_v42 = vpack.c.bf16 %v1337_v40, %v1336_v39 }
 0x205   : > { %v1023_v49 = vmax.f32 %v929_v44, 0.0 }
 0x206   : > { %v1021_v51 = vmax.f32 %v921_v46, 0.0  ;;  %2438 = vmatprep.subr.bf16.mxu0 %v2437_v42 }
 0x207   : > { %v1049_v52 = vpack.c.bf16 %v1023_v49, %v1022_v48  ;;  %2440 = vmatpush3.bf16.msra.mxu0 %v2437_v42  ;;  %v1338_v49 = vld [vmem:[%s3379_s7 + $0x70] sm:$0xff] }
 0x208   : > { %v1048_v53 = vpack.c.bf16 %v1021_v51, %v1020_v50  ;;  %v1339_v50 = vld [vmem:[%s3379_s7 + $0x78] sm:$0xff] }
 0x20a   : > { %2309 = vmatprep.mubr.bf16.mxu1 %v1048_v53  ;;  %v2441_v53 = vpack.c.bf16 %v1339_v50, %v1338_v49 }
 0x20b   : > { %2310 = vmatmul.mubr.bf16.gmra.mrb[56].mxu1 %v1049_v52 }
 0x20c   : > { %2442 = vmatprep.subr.bf16.mxu0 %v2441_v53 }
 0x20d   : > { %2444 = vmatpush3.bf16.msra.mxu0 %v2441_v53 }
 0x210   : > { %v2267_v54 = vpop.f32.mrb[28].mxu1 }
 0x211   : > { %v942_v55 = vadd.f32 %v2267_v54, %v2955_v7  ;;  %v933_v57 = vpop.f32.mrb[29].mxu1 }
 0x212   : > { %v934_v58 = vadd.f32 %v2955_v7, %v933_v57  ;;  %v2268_v24 = vpop.f32.mrb[30].mxu1 }
 0x213   : > { %v945_v47 = vadd.f32 %v2268_v24, %v2955_v7  ;;  %v936_v59 = vpop.f32.mrb[31].mxu1  ;;  %v1026_v60 = vmax.f32 %v942_v55, 0.0 }
 0x214   : > { %v937_v8 = vadd.f32 %v2955_v7, %v936_v59  ;;  %v1024_v61 = vmax.f32 %v934_v58, 0.0 }
 0x215   : > { %v1027_v29 = vmax.f32 %v945_v47, 0.0 }
 0x216   : > { %v1025_v62 = vmax.f32 %v937_v8, 0.0 }
 0x217   : > { %v1051_v63 = vpack.c.bf16 %v1027_v29, %v1026_v60 }
 0x218   : > { %v1050_v0 = vpack.c.bf16 %v1025_v62, %v1024_v61 }
 0x21a   : > { %2313 = vmatprep.mubr.bf16.mxu1 %v1050_v0  ;;  %v3004_v0 = vld [vmem:[%s3378_s6] ss:$0 sm:$0xff] }
 0x21b   : > { %2314 = vmatmul.mubr.bf16.gmra.mrb[60].mxu1 %v1051_v63 }
 0x220   : > { %v2271_v1 = vpop.f32.mrb[32].mxu1 }
 0x221   : > { %v958_v2 = vadd.f32 %v2271_v1, %v2955_v7  ;;  %v949_v56 = vpop.f32.mrb[33].mxu1 }
 0x222   : > { %v950_v3 = vadd.f32 %v2955_v7, %v949_v56  ;;  %v2272_v4 = vpop.f32.mrb[34].mxu1 }
 0x223   : > { %v961_v5 = vadd.f32 %v2272_v4, %v2955_v7  ;;  %v952_v6 = vpop.f32.mrb[35].mxu1  ;;  %v1030_v10 = vmax.f32 %v958_v2, 0.0 }
 0x224   : > { %v953_v9 = vadd.f32 %v2955_v7, %v952_v6  ;;  %v1028_v12 = vmax.f32 %v950_v3, 0.0 }
 0x225   : > { %v1031_v11 = vmax.f32 %v961_v5, 0.0 }
 0x226   : > { %v1029_v13 = vmax.f32 %v953_v9, 0.0 }
 0x227   : > { %v1053_v14 = vpack.c.bf16 %v1031_v11, %v1030_v10 }
 0x228   : > { %v1052_v15 = vpack.c.bf16 %v1029_v13, %v1028_v12 }
 0x22a   : > { %2317 = vmatprep.mubr.bf16.mxu1 %v1052_v15 }
 0x22b   : > { %2318 = vmatmul.mubr.bf16.gmra.mrb[64].mxu1 %v1053_v14 }
 0x230   : > { %v2275_v16 = vpop.f32.mrb[36].mxu1 }
 0x231   : > { %v974_v17 = vadd.f32 %v2275_v16, %v2955_v7  ;;  %v965_v18 = vpop.f32.mrb[37].mxu1 }
 0x232   : > { %v966_v19 = vadd.f32 %v2955_v7, %v965_v18  ;;  %v2276_v20 = vpop.f32.mrb[38].mxu1 }
 0x233   : > { %v977_v21 = vadd.f32 %v2276_v20, %v2955_v7  ;;  %v968_v22 = vpop.f32.mrb[39].mxu1  ;;  %v1034_v25 = vmax.f32 %v974_v17, 0.0 }
 0x234   : > { %v969_v23 = vadd.f32 %v2955_v7, %v968_v22  ;;  %v1032_v27 = vmax.f32 %v966_v19, 0.0 }
 0x235   : > { %v1035_v26 = vmax.f32 %v977_v21, 0.0 }
 0x236   : > { %v1033_v28 = vmax.f32 %v969_v23, 0.0 }
 0x237   : > { %v1055_v30 = vpack.c.bf16 %v1035_v26, %v1034_v25 }
 0x238   : > { %v1054_v31 = vpack.c.bf16 %v1033_v28, %v1032_v27  ;;  %v2279_v32 = vpop.f32.mrb[40].mxu1 }
 0x239   : > { %v990_v33 = vadd.f32 %v2279_v32, %v2955_v7  ;;  %v981_v34 = vpop.f32.mrb[41].mxu1 }
 0x23a   : > { %v982_v35 = vadd.f32 %v2955_v7, %v981_v34  ;;  %v2280_v36 = vpop.f32.mrb[42].mxu1  ;;  %2321 = vmatprep.mubr.bf16.mxu1 %v1054_v31 }
 0x23b   : > { %v993_v37 = vadd.f32 %v2280_v36, %v2955_v7  ;;  %v984_v38 = vpop.f32.mrb[43].mxu1  ;;  %2322 = vmatmul.mubr.bf16.gmra.mrb[68].mxu1 %v1055_v30  ;;  %v1038_v43 = vmax.f32 %v990_v33, 0.0 }
 0x23c   : > { %v985_v41 = vadd.f32 %v2955_v7, %v984_v38  ;;  %v1036_v45 = vmax.f32 %v982_v35, 0.0 }
 0x23d   : > { %v1039_v44 = vmax.f32 %v993_v37, 0.0 }
 0x23e   : > { %v1037_v46 = vmax.f32 %v985_v41, 0.0 }
 0x23f   : > { %v1057_v48 = vpack.c.bf16 %v1039_v44, %v1038_v43 }
 0x240   : > { %v1056_v51 = vpack.c.bf16 %v1037_v46, %v1036_v45  ;;  %v2283_v52 = vpop.f32.mrb[44].mxu1 }
 0x241   : > { %v1006_v54 = vadd.f32 %v2283_v52, %v2955_v7  ;;  %v997_v55 = vpop.f32.mrb[45].mxu1 }
 0x242   : > { %v998_v57 = vadd.f32 %v2955_v7, %v997_v55  ;;  %v2284_v58 = vpop.f32.mrb[46].mxu1  ;;  %2325 = vmatprep.mubr.bf16.mxu1 %v1056_v51 }
 0x243   : > { %v1009_v24 = vadd.f32 %v2284_v58, %v2955_v7  ;;  %v1000_v47 = vpop.f32.mrb[47].mxu1  ;;  %2326 = vmatmul.mubr.bf16.gmra.mrb[72].mxu1 %v1057_v48  ;;  %v1042_v8 = vmax.f32 %v1006_v54, 0.0 }
 0x244   : > { %v1001_v59 = vadd.f32 %v2955_v7, %v1000_v47  ;;  %v1040_v29 = vmax.f32 %v998_v57, 0.0 }
 0x245   : > { %v1043_v60 = vmax.f32 %v1009_v24, 0.0 }
 0x246   : > { %v1041_v61 = vmax.f32 %v1001_v59, 0.0 }
 0x247   : > { %v1059_v62 = vpack.c.bf16 %v1043_v60, %v1042_v8 }
 0x248   : > { %v1058_v63 = vpack.c.bf16 %v1041_v61, %v1040_v29 }
 0x24a   : > { %2329 = vmatprep.mubr.bf16.mxu1 %v1058_v63 }
 0x24b   : > { %2330 = vmatmul.mubr.bf16.gmra.mrb[76].mxu1 %v1059_v62 }
 0x2be   : > { %v2303_v1 = vpop.f32.mrb[48].mxu1 }
 0x2bf   : > { %v1165_v2 = vpop.f32.mrb[49].mxu1  ;;  %v1174_v7 = vadd.f32 %v2303_v1, %v3004_v0 }
 0x2c0   : > { %v1166_v56 = vadd.f32 %v3004_v0, %v1165_v2  ;;  %v2304_v3 = vpop.f32.mrb[50].mxu1 }
 0x2c1   : > { %v1168_v4 = vpop.f32.mrb[51].mxu1  ;;  %v1177_v9 = vadd.f32 %v2304_v3, %v3004_v0  ;;  %v1294_v11 = vmax.f32 %v1174_v7, 0.0 }
 0x2c2   : > { %v1292_v5 = vmax.f32 %v1166_v56, 0.0  ;;  %v1169_v6 = vadd.f32 %v3004_v0, %v1168_v4 }
 0x2c3   : > { %v1295_v12 = vmax.f32 %v1177_v9, 0.0 }
 0x2c4   : > { %v1293_v10 = vmax.f32 %v1169_v6, 0.0  ;;  %2365 = vmatprep.mubr.f32.mxu0 %v1292_v5 }
 0x2c6   : > { %2366 = vmatmul.mubr.f32.vlgmr.msra.gmra.mrb[48].mxu0 %v1293_v10 }
 0x2c7   : > { %2368 = vmatprep.mubr.f32.mxu0 %v1294_v11 }
 0x2ca   : > { %2369 = vmatmul.mubr.f32.gmra.mrb[50].mxu0 %v1295_v12 }
 0x2ce   : > { %v2307_v13 = vpop.f32.mrb[52].mxu1 }
 0x2cf   : > { %v1181_v14 = vpop.f32.mrb[53].mxu1  ;;  %v1190_v17 = vadd.f32 %v2307_v13, %v3004_v0 }
 0x2d0   : > { %v1182_v15 = vadd.f32 %v3004_v0, %v1181_v14  ;;  %v2308_v16 = vpop.f32.mrb[54].mxu1 }
 0x2d1   : > { %v1184_v18 = vpop.f32.mrb[55].mxu1  ;;  %v1193_v21 = vadd.f32 %v2308_v16, %v3004_v0  ;;  %v1298_v23 = vmax.f32 %v1190_v17, 0.0 }
 0x2d2   : > { %v1296_v19 = vmax.f32 %v1182_v15, 0.0  ;;  %v1185_v20 = vadd.f32 %v3004_v0, %v1184_v18 }
 0x2d3   : > { %v1299_v25 = vmax.f32 %v1193_v21, 0.0 }
 0x2d4   : > { %v1297_v22 = vmax.f32 %v1185_v20, 0.0  ;;  %2371 = vmatprep.mubr.f32.mxu0 %v1296_v19 }
 0x2d6   : > { %2372 = vmatmul.mubr.f32.gmra.mrb[52].mxu0 %v1297_v22 }
 0x2d7   : > { %2374 = vmatprep.mubr.f32.mxu0 %v1298_v23 }
 0x2da   : > { %2375 = vmatmul.mubr.f32.gmra.mrb[54].mxu0 %v1299_v25 }
 0x2de   : > { %v2311_v26 = vpop.f32.mrb[56].mxu1 }
 0x2df   : > { %v1197_v27 = vpop.f32.mrb[57].mxu1  ;;  %v1206_v31 = vadd.f32 %v2311_v26, %v3004_v0 }
 0x2e0   : > { %v1198_v28 = vadd.f32 %v3004_v0, %v1197_v27  ;;  %v2312_v30 = vpop.f32.mrb[58].mxu1 }
 0x2e1   : > { %v1200_v32 = vpop.f32.mrb[59].mxu1  ;;  %v1209_v35 = vadd.f32 %v2312_v30, %v3004_v0  ;;  %v1302_v37 = vmax.f32 %v1206_v31, 0.0 }
 0x2e2   : > { %v1300_v33 = vmax.f32 %v1198_v28, 0.0  ;;  %v1201_v34 = vadd.f32 %v3004_v0, %v1200_v32 }
 0x2e3   : > { %v1303_v38 = vmax.f32 %v1209_v35, 0.0 }
 0x2e4   : > { %v1301_v36 = vmax.f32 %v1201_v34, 0.0  ;;  %2377 = vmatprep.mubr.f32.mxu0 %v1300_v33 }
 0x2e6   : > { %2378 = vmatmul.mubr.f32.gmra.mrb[56].mxu0 %v1301_v36  ;;  %v3041_v36 = vld [vmem:[%s3380_s8] ss:$0 sm:$0xff] }
 0x2e7   : > { %2380 = vmatprep.mubr.f32.mxu0 %v1302_v37 }
 0x2ea   : > { %2381 = vmatmul.mubr.f32.gmra.mrb[58].mxu0 %v1303_v38 }
 0x2ee   : > { %v2315_v39 = vpop.f32.mrb[60].mxu1 }
 0x2ef   : > { %v1213_v40 = vpop.f32.mrb[61].mxu1  ;;  %v1222_v43 = vadd.f32 %v2315_v39, %v3004_v0 }
 0x2f0   : > { %v1214_v41 = vadd.f32 %v3004_v0, %v1213_v40  ;;  %v2316_v42 = vpop.f32.mrb[62].mxu1 }
 0x2f1   : > { %v1216_v44 = vpop.f32.mrb[63].mxu1  ;;  %v1225_v48 = vadd.f32 %v2316_v42, %v3004_v0  ;;  %v1306_v50 = vmax.f32 %v1222_v43, 0.0 }
 0x2f2   : > { %v1304_v45 = vmax.f32 %v1214_v41, 0.0  ;;  %v1217_v46 = vadd.f32 %v3004_v0, %v1216_v44 }
 0x2f3   : > { %v1307_v51 = vmax.f32 %v1225_v48, 0.0 }
 0x2f4   : > { %v1305_v49 = vmax.f32 %v1217_v46, 0.0  ;;  %2383 = vmatprep.mubr.f32.mxu0 %v1304_v45 }
 0x2f6   : > { %2384 = vmatmul.mubr.f32.gmra.mrb[60].mxu0 %v1305_v49 }
 0x2f7   : > { %2386 = vmatprep.mubr.f32.mxu0 %v1306_v50 }
 0x2fa   : > { %2387 = vmatmul.mubr.f32.gmra.mrb[62].mxu0 %v1307_v51 }
 0x2fe   : > { %v2319_v52 = vpop.f32.mrb[64].mxu1 }
 0x2ff   : > { %v1229_v53 = vpop.f32.mrb[65].mxu1  ;;  %v1238_v57 = vadd.f32 %v2319_v52, %v3004_v0 }
 0x300   : > { %v1230_v54 = vadd.f32 %v3004_v0, %v1229_v53  ;;  %v2320_v55 = vpop.f32.mrb[66].mxu1 }
 0x301   : > { %v1232_v58 = vpop.f32.mrb[67].mxu1  ;;  %v1241_v59 = vadd.f32 %v2320_v55, %v3004_v0  ;;  %v1310_v60 = vmax.f32 %v1238_v57, 0.0 }
 0x302   : > { %v1308_v24 = vmax.f32 %v1230_v54, 0.0  ;;  %v1233_v47 = vadd.f32 %v3004_v0, %v1232_v58 }
 0x303   : > { %v1311_v29 = vmax.f32 %v1241_v59, 0.0 }
 0x304   : > { %v1309_v8 = vmax.f32 %v1233_v47, 0.0  ;;  %2389 = vmatprep.mubr.f32.mxu0 %v1308_v24 }
 0x306   : > { %2390 = vmatmul.mubr.f32.gmra.mrb[64].mxu0 %v1309_v8 }
 0x307   : > { %2392 = vmatprep.mubr.f32.mxu0 %v1310_v60 }
 0x30a   : > { %2393 = vmatmul.mubr.f32.gmra.mrb[66].mxu0 %v1311_v29 }
 0x30e   : > { %v2323_v61 = vpop.f32.mrb[68].mxu1 }
 0x30f   : > { %v1245_v62 = vpop.f32.mrb[69].mxu1  ;;  %v1254_v2 = vadd.f32 %v2323_v61, %v3004_v0 }
 0x310   : > { %v1246_v63 = vadd.f32 %v3004_v0, %v1245_v62  ;;  %v2324_v1 = vpop.f32.mrb[70].mxu1 }
 0x311   : > { %v1248_v56 = vpop.f32.mrb[71].mxu1  ;;  %v1257_v4 = vadd.f32 %v2324_v1, %v3004_v0  ;;  %v1314_v6 = vmax.f32 %v1254_v2, 0.0 }
 0x312   : > { %v1312_v3 = vmax.f32 %v1246_v63, 0.0  ;;  %v1249_v7 = vadd.f32 %v3004_v0, %v1248_v56 }
 0x313   : > { %v1315_v11 = vmax.f32 %v1257_v4, 0.0 }
 0x314   : > { %v1313_v5 = vmax.f32 %v1249_v7, 0.0  ;;  %2395 = vmatprep.mubr.f32.mxu0 %v1312_v3 }
 0x316   : > { %v2327_v9 = vpop.f32.mrb[72].mxu1  ;;  %2396 = vmatmul.mubr.f32.gmra.mrb[68].mxu0 %v1313_v5 }
 0x317   : > { %v1261_v10 = vpop.f32.mrb[73].mxu1  ;;  %2398 = vmatprep.mubr.f32.mxu0 %v1314_v6  ;;  %v1270_v14 = vadd.f32 %v2327_v9, %v3004_v0 }
 0x318   : > { %v1262_v12 = vadd.f32 %v3004_v0, %v1261_v10  ;;  %v2328_v13 = vpop.f32.mrb[74].mxu1 }
 0x319   : > { %v1264_v15 = vpop.f32.mrb[75].mxu1  ;;  %v1273_v18 = vadd.f32 %v2328_v13, %v3004_v0  ;;  %v1318_v20 = vmax.f32 %v1270_v14, 0.0 }
 0x31a   : > { %v1316_v16 = vmax.f32 %v1262_v12, 0.0  ;;  %v1265_v17 = vadd.f32 %v3004_v0, %v1264_v15  ;;  %2399 = vmatmul.mubr.f32.gmra.mrb[70].mxu0 %v1315_v11 }
 0x31b   : > { %v1319_v23 = vmax.f32 %v1273_v18, 0.0 }
 0x31c   : > { %v1317_v19 = vmax.f32 %v1265_v17, 0.0  ;;  %2401 = vmatprep.mubr.f32.mxu0 %v1316_v16 }
 0x31e   : > { %v2331_v21 = vpop.f32.mrb[76].mxu1  ;;  %2402 = vmatmul.mubr.f32.gmra.mrb[72].mxu0 %v1317_v19 }
 0x31f   : > { %v1277_v22 = vpop.f32.mrb[77].mxu1  ;;  %2404 = vmatprep.mubr.f32.mxu0 %v1318_v20  ;;  %v1286_v27 = vadd.f32 %v2331_v21, %v3004_v0 }
 0x320   : > { %v1278_v25 = vadd.f32 %v3004_v0, %v1277_v22  ;;  %v2332_v26 = vpop.f32.mrb[78].mxu1 }
 0x321   : > { %v1280_v28 = vpop.f32.mrb[79].mxu1  ;;  %v1289_v32 = vadd.f32 %v2332_v26, %v3004_v0  ;;  %v1322_v34 = vmax.f32 %v1286_v27, 0.0 }
 0x322   : > { %v1320_v30 = vmax.f32 %v1278_v25, 0.0  ;;  %v1281_v31 = vadd.f32 %v3004_v0, %v1280_v28  ;;  %2405 = vmatmul.mubr.f32.gmra.mrb[74].mxu0 %v1319_v23 }
 0x323   : > { %v1323_v35 = vmax.f32 %v1289_v32, 0.0 }
 0x324   : > { %v1321_v33 = vmax.f32 %v1281_v31, 0.0  ;;  %2407 = vmatprep.mubr.f32.mxu0 %v1320_v30 }
 0x326   : > { %2408 = vmatmul.mubr.f32.gmra.mrb[76].mxu0 %v1321_v33 }
 0x327   : > { %2410 = vmatprep.mubr.f32.mxu0 %v1322_v34 }
 0x32a   : > { %2411 = vmatmul.mubr.f32.gmra.mrb[78].mxu0 %v1323_v35 }
 0x399   : > { %v2367_v37 = vpop.f32.mrb[48].mxu0 }
 0x39a   : > { %v3044_v38 = vadd.f32 %v2367_v37, %v3041_v36  ;;  %v1413_v39 = vpop.f32.mrb[49].mxu0 }
 0x39b   : > { %v3048_v40 = vadd.f32 %v3041_v36, %v1413_v39 }
 0x39c   : > { %1574 = vmax.xlane.f32.xlu0 %v3044_v38 }
 0x39d   : > { %v2370_v0 = vpop.f32.mrb[50].mxu0 }
 0x39e   : > { %v3051_v41 = vadd.f32 %v2370_v0, %v3041_v36  ;;  %v1423_v42 = vpop.f32.mrb[51].mxu0 }
 0x39f   : > { %v3056_v43 = vadd.f32 %v3041_v36, %v1423_v42 }
 0x3a0   : > { %1578 = vmax.xlane.f32.xlu1 %v3051_v41  ;;  %1572 = vmax.xlane.f32.xlu0 %v3048_v40 }
 0x3a4   : > { %1576 = vmax.xlane.f32.xlu1 %v3056_v43 }
 0x3a9   : > { %v2373_v44 = vpop.f32.mrb[52].mxu0 }
 0x3aa   : > { %v3060_v45 = vadd.f32 %v2373_v44, %v3041_v36  ;;  %v1433_v46 = vpop.f32.mrb[53].mxu0 }
 0x3ab   : > { %v3063_v48 = vadd.f32 %v3041_v36, %v1433_v46 }
 0x3ac   : > { %1582 = vmax.xlane.f32.xlu1 %v3060_v45 }
 0x3ad   : > { %v2376_v49 = vpop.f32.mrb[54].mxu0  ;;  %1580 = vmax.xlane.f32.xlu0 %v3063_v48 }
 0x3ae   : > { %v3068_v50 = vadd.f32 %v2376_v49, %v3041_v36  ;;  %v1443_v51 = vpop.f32.mrb[55].mxu0 }
 0x3af   : > { %v3071_v52 = vadd.f32 %v3041_v36, %v1443_v51 }
 0x3b0   : > { %1586 = vmax.xlane.f32.xlu1 %v3068_v50 }
 0x3b1   : > { %1584 = vmax.xlane.f32.xlu0 %v3071_v52 }
 0x3b9   : > { %v2379_v53 = vpop.f32.mrb[56].mxu0 }
 0x3ba   : > { %v3076_v54 = vadd.f32 %v2379_v53, %v3041_v36  ;;  %v1453_v55 = vpop.f32.mrb[57].mxu0 }
 0x3bb   : > { %v3079_v57 = vadd.f32 %v3041_v36, %v1453_v55 }
 0x3bc   : > { %1590 = vmax.xlane.f32.xlu1 %v3076_v54 }
 0x3bd   : > { %v2382_v58 = vpop.f32.mrb[58].mxu0  ;;  %1588 = vmax.xlane.f32.xlu0 %v3079_v57 }
 0x3be   : > { %v3084_v24 = vadd.f32 %v2382_v58, %v3041_v36  ;;  %v1463_v47 = vpop.f32.mrb[59].mxu0 }
 0x3bf   : > { %v3087_v59 = vadd.f32 %v3041_v36, %v1463_v47 }
 0x3c0   : > { %1594 = vmax.xlane.f32.xlu1 %v3084_v24 }
 0x3c1   : > { %1592 = vmax.xlane.f32.xlu0 %v3087_v59 }
 0x3c9   : > { %v2385_v8 = vpop.f32.mrb[60].mxu0 }
 0x3ca   : > { %v3092_v60 = vadd.f32 %v2385_v8, %v3041_v36  ;;  %v1473_v29 = vpop.f32.mrb[61].mxu0 }
 0x3cb   : > { %v3095_v61 = vadd.f32 %v3041_v36, %v1473_v29 }
 0x3cc   : > { %1598 = vmax.xlane.f32.xlu1 %v3092_v60 }
 0x3cd   : > { %v2388_v62 = vpop.f32.mrb[62].mxu0  ;;  %1596 = vmax.xlane.f32.xlu0 %v3095_v61 }
 0x3ce   : > { %v3100_v63 = vadd.f32 %v2388_v62, %v3041_v36  ;;  %v1483_v1 = vpop.f32.mrb[63].mxu0 }
 0x3cf   : > { %v3103_v2 = vadd.f32 %v3041_v36, %v1483_v1 }
 0x3d0   : > { %1602 = vmax.xlane.f32.xlu1 %v3100_v63 }
 0x3d1   : > { %1600 = vmax.xlane.f32.xlu0 %v3103_v2 }
 0x3d9   : > { %v2391_v56 = vpop.f32.mrb[64].mxu0 }
 0x3da   : > { %v3108_v3 = vadd.f32 %v2391_v56, %v3041_v36  ;;  %v1493_v7 = vpop.f32.mrb[65].mxu0 }
 0x3db   : > { %v3111_v4 = vadd.f32 %v3041_v36, %v1493_v7 }
 0x3dc   : > { %1606 = vmax.xlane.f32.xlu1 %v3108_v3 }
 0x3dd   : > { %v2394_v5 = vpop.f32.mrb[66].mxu0  ;;  %1604 = vmax.xlane.f32.xlu0 %v3111_v4 }
 0x3de   : > { %v3116_v6 = vadd.f32 %v2394_v5, %v3041_v36  ;;  %v1503_v9 = vpop.f32.mrb[67].mxu0 }
 0x3df   : > { %v3119_v10 = vadd.f32 %v3041_v36, %v1503_v9 }
 0x3e0   : > { %1610 = vmax.xlane.f32.xlu1 %v3116_v6 }
 0x3e1   : > { %1608 = vmax.xlane.f32.xlu0 %v3119_v10 }
 0x3e9   : > { %v2397_v11 = vpop.f32.mrb[68].mxu0 }
 0x3ea   : > { %v3124_v12 = vadd.f32 %v2397_v11, %v3041_v36  ;;  %v1513_v13 = vpop.f32.mrb[69].mxu0 }
 0x3eb   : > { %v3127_v14 = vadd.f32 %v3041_v36, %v1513_v13 }
 0x3ec   : > { %1614 = vmax.xlane.f32.xlu1 %v3124_v12 }
 0x3ed   : > { %v2400_v15 = vpop.f32.mrb[70].mxu0  ;;  %1612 = vmax.xlane.f32.xlu0 %v3127_v14 }
 0x3ee   : > { %v3132_v16 = vadd.f32 %v2400_v15, %v3041_v36  ;;  %v1523_v17 = vpop.f32.mrb[71].mxu0 }
 0x3ef   : > { %v3135_v18 = vadd.f32 %v3041_v36, %v1523_v17 }
 0x3f0   : > { %1618 = vmax.xlane.f32.xlu1 %v3132_v16 }
 0x3f1   : > { %v2403_v19 = vpop.f32.mrb[72].mxu0  ;;  %1616 = vmax.xlane.f32.xlu0 %v3135_v18 }
 0x3f2   : > { %v3140_v20 = vadd.f32 %v2403_v19, %v3041_v36  ;;  %v1533_v21 = vpop.f32.mrb[73].mxu0 }
 0x3f3   : > { %v3143_v22 = vadd.f32 %v3041_v36, %v1533_v21 }
 0x3f4   : > { %1622 = vmax.xlane.f32.xlu1 %v3140_v20 }
 0x3f5   : > { %v2406_v23 = vpop.f32.mrb[74].mxu0  ;;  %1620 = vmax.xlane.f32.xlu0 %v3143_v22 }
 0x3f6   : > { %v3148_v25 = vadd.f32 %v2406_v23, %v3041_v36  ;;  %v1543_v26 = vpop.f32.mrb[75].mxu0 }
 0x3f7   : > { %v3151_v27 = vadd.f32 %v3041_v36, %v1543_v26 }
 0x3f8   : > { %1626 = vmax.xlane.f32.xlu1 %v3148_v25 }
 0x3f9   : > { %v2409_v28 = vpop.f32.mrb[76].mxu0  ;;  %1624 = vmax.xlane.f32.xlu0 %v3151_v27 }
 0x3fa   : > { %v3156_v30 = vadd.f32 %v2409_v28, %v3041_v36  ;;  %v1553_v31 = vpop.f32.mrb[77].mxu0 }
 0x3fb   : > { %v3159_v32 = vadd.f32 %v3041_v36, %v1553_v31 }
 0x3fc   : > { %1630 = vmax.xlane.f32.xlu1 %v3156_v30 }
 0x3fd   : > { %v2412_v33 = vpop.f32.mrb[78].mxu0  ;;  %1628 = vmax.xlane.f32.xlu0 %v3159_v32 }
 0x3fe   : > { %v3164_v34 = vadd.f32 %v2412_v33, %v3041_v36  ;;  %v1563_v35 = vpop.f32.mrb[79].mxu0 }
 0x3ff   : > { %v3167_v37 = vadd.f32 %v3041_v36, %v1563_v35 }
 0x400   : > { %1634 = vmax.xlane.f32.xlu1 %v3164_v34 }
 0x401   : > { %1632 = vmax.xlane.f32.xlu0 %v3167_v37 }
 0x429   : > { %v1575_v39 = vpop.xlane.xlu0 %1574 }
 0x42a   : > { %v3172_v0 = vsub.f32 %v3044_v38, %v1575_v39 }
 0x42c   : > { %v1670_v42 = vmul.f32 1.442695, %v3172_v0 }
 0x42d   : > { %v1579_v44 = vpop.xlane.xlu1 %1578  ;;  %v1573_v46 = vpop.xlane.xlu0 %1572 }
 0x42e   : > { %2501 = vpow2.f32 %v1670_v42  ;;  %v3176_v49 = vsub.f32 %v3051_v41, %v1579_v44  ;;  %v3179_v51 = vsub.f32 %v3048_v40, %v1573_v46 }
 0x430   : > { %v1674_v36 = vmul.f32 1.442695, %v3176_v49  ;;  %v1668_v53 = vmul.f32 1.442695, %v3179_v51 }
 0x431   : > { %v1577_v55 = vpop.xlane.xlu1 %1576 }
 0x432   : > { %2503 = vpow2.f32 %v1674_v36  ;;  %v3184_v38 = vsub.f32 %v3056_v43, %v1577_v55 }
 0x433   : > { %2505 = vpow2.f32 %v1668_v53 }
 0x434   : > { %v1672_v58 = vmul.f32 1.442695, %v3184_v38 }
 0x436   : > { %2507 = vpow2.f32 %v1672_v58 }
 0x438   : > { %v2502_v47 = vpop.eup %2501 }
 0x439   : > { %1734 = vadd.xlane.f32.xlu1 %v2502_v47  ;;  %v1583_v41 = vpop.xlane.xlu1 %1582 }
 0x43a   : > { %v3188_v8 = vsub.f32 %v3060_v45, %v1583_v41  ;;  %v1581_v40 = vpop.xlane.xlu0 %1580 }
 0x43b   : > { %v3191_v29 = vsub.f32 %v3063_v48, %v1581_v40 }
 0x43c   : > { %v2504_v62 = vpop.eup %2503  ;;  %v1678_v1 = vmul.f32 1.442695, %v3188_v8 }
 0x43d   : > { %v2506_v56 = vpop.eup %2505  ;;  %v1676_v43 = vmul.f32 1.442695, %v3191_v29  ;;  %1738 = vadd.xlane.f32.xlu1 %v2504_v62  ;;  %v1587_v7 = vpop.xlane.xlu1 %1586 }
 0x43e   : > { %2509 = vpow2.f32 %v1678_v1  ;;  %v3196_v5 = vsub.f32 %v3068_v50, %v1587_v7  ;;  %1732 = vadd.xlane.f32.xlu0 %v2506_v56  ;;  %v1585_v9 = vpop.xlane.xlu0 %1584 }
 0x43f   : > { %2511 = vpow2.f32 %v1676_v43  ;;  %v3199_v45 = vsub.f32 %v3071_v52, %v1585_v9 }
 0x440   : > { %v2508_v48 = vpop.eup %2507  ;;  %v1682_v11 = vmul.f32 1.442695, %v3196_v5 }
 0x441   : > { %v1680_v13 = vmul.f32 1.442695, %v3199_v45 }
 0x442   : > { %2513 = vpow2.f32 %v1682_v11  ;;  %1736 = vadd.xlane.f32.xlu0 %v2508_v48 }
 0x443   : > { %2515 = vpow2.f32 %v1680_v13 }
 0x448   : > { %v2510_v15 = vpop.eup %2509 }
 0x449   : > { %v2512_v17 = vpop.eup %2511  ;;  %1742 = vadd.xlane.f32.xlu1 %v2510_v15  ;;  %v1591_v19 = vpop.xlane.xlu1 %1590 }
 0x44a   : > { %v3204_v50 = vsub.f32 %v3076_v54, %v1591_v19  ;;  %1740 = vadd.xlane.f32.xlu0 %v2512_v17  ;;  %v1589_v21 = vpop.xlane.xlu0 %1588 }
 0x44b   : > { %v3207_v52 = vsub.f32 %v3079_v57, %v1589_v21 }
 0x44c   : > { %v2514_v23 = vpop.eup %2513  ;;  %v1686_v26 = vmul.f32 1.442695, %v3204_v50 }
 0x44d   : > { %v2516_v28 = vpop.eup %2515  ;;  %v1684_v31 = vmul.f32 1.442695, %v3207_v52  ;;  %1746 = vadd.xlane.f32.xlu1 %v2514_v23  ;;  %v1595_v33 = vpop.xlane.xlu1 %1594 }
 0x44e   : > { %2517 = vpow2.f32 %v1686_v26  ;;  %v3212_v35 = vsub.f32 %v3084_v24, %v1595_v33  ;;  %1744 = vadd.xlane.f32.xlu0 %v2516_v28  ;;  %v1593_v54 = vpop.xlane.xlu0 %1592 }
 0x44f   : > { %2519 = vpow2.f32 %v1684_v31  ;;  %v3215_v39 = vsub.f32 %v3087_v59, %v1593_v54 }
 0x450   : > { %v1690_v57 = vmul.f32 1.442695, %v3212_v35 }
 0x451   : > { %v1688_v42 = vmul.f32 1.442695, %v3215_v39 }
 0x452   : > { %2521 = vpow2.f32 %v1690_v57 }
 0x453   : > { %2523 = vpow2.f32 %v1688_v42 }
 0x458   : > { %v2518_v44 = vpop.eup %2517 }
 0x459   : > { %v2520_v46 = vpop.eup %2519  ;;  %1750 = vadd.xlane.f32.xlu1 %v2518_v44  ;;  %v1599_v36 = vpop.xlane.xlu1 %1598 }
 0x45a   : > { %v3220_v53 = vsub.f32 %v3092_v60, %v1599_v36  ;;  %1748 = vadd.xlane.f32.xlu0 %v2520_v46  ;;  %v1597_v24 = vpop.xlane.xlu0 %1596 }
 0x45b   : > { %v3223_v55 = vsub.f32 %v3095_v61, %v1597_v24 }
 0x45c   : > { %v2522_v59 = vpop.eup %2521  ;;  %v1694_v58 = vmul.f32 1.442695, %v3220_v53 }
 0x45d   : > { %v2524_v47 = vpop.eup %2523  ;;  %v1692_v41 = vmul.f32 1.442695, %v3223_v55  ;;  %1754 = vadd.xlane.f32.xlu1 %v2522_v59  ;;  %v1603_v40 = vpop.xlane.xlu1 %1602 }
 0x45e   : > { %2525 = vpow2.f32 %v1694_v58  ;;  %v3228_v62 = vsub.f32 %v3100_v63, %v1603_v40  ;;  %1752 = vadd.xlane.f32.xlu0 %v2524_v47  ;;  %v1601_v60 = vpop.xlane.xlu0 %1600 }
 0x45f   : > { %2527 = vpow2.f32 %v1692_v41  ;;  %v3231_v1 = vsub.f32 %v3103_v2, %v1601_v60 }
 0x460   : > { %v1698_v61 = vmul.f32 1.442695, %v3228_v62 }
 0x461   : > { %v1696_v56 = vmul.f32 1.442695, %v3231_v1 }
 0x462   : > { %2529 = vpow2.f32 %v1698_v61 }
 0x463   : > { %2531 = vpow2.f32 %v1696_v56 }
 0x468   : > { %v2526_v43 = vpop.eup %2525 }
 0x469   : > { %v2528_v7 = vpop.eup %2527  ;;  %1758 = vadd.xlane.f32.xlu1 %v2526_v43  ;;  %v1607_v9 = vpop.xlane.xlu1 %1606 }
 0x46a   : > { %v3236_v48 = vsub.f32 %v3108_v3, %v1607_v9  ;;  %1756 = vadd.xlane.f32.xlu0 %v2528_v7  ;;  %v1605_v63 = vpop.xlane.xlu0 %1604 }
 0x46b   : > { %v3239_v11 = vsub.f32 %v3111_v4, %v1605_v63 }
 0x46c   : > { %v2530_v2 = vpop.eup %2529  ;;  %v1702_v13 = vmul.f32 1.442695, %v3236_v48 }
 0x46d   : > { %v2532_v15 = vpop.eup %2531  ;;  %v1700_v17 = vmul.f32 1.442695, %v3239_v11  ;;  %1762 = vadd.xlane.f32.xlu1 %v2530_v2  ;;  %v1611_v19 = vpop.xlane.xlu1 %1610 }
 0x46e   : > { %2533 = vpow2.f32 %v1702_v13  ;;  %v3244_v21 = vsub.f32 %v3116_v6, %v1611_v19  ;;  %1760 = vadd.xlane.f32.xlu0 %v2532_v15  ;;  %v1609_v3 = vpop.xlane.xlu0 %1608 }
 0x46f   : > { %2535 = vpow2.f32 %v1700_v17  ;;  %v3247_v23 = vsub.f32 %v3119_v10, %v1609_v3 }
 0x470   : > { %v1706_v4 = vmul.f32 1.442695, %v3244_v21 }
 0x471   : > { %v1704_v26 = vmul.f32 1.442695, %v3247_v23 }
 0x472   : > { %2537 = vpow2.f32 %v1706_v4 }
 0x473   : > { %2539 = vpow2.f32 %v1704_v26 }
 0x478   : > { %v2534_v28 = vpop.eup %2533 }
 0x479   : > { %v2536_v31 = vpop.eup %2535  ;;  %1766 = vadd.xlane.f32.xlu1 %v2534_v28  ;;  %v1615_v33 = vpop.xlane.xlu1 %1614 }
 0x47a   : > { %v3252_v54 = vsub.f32 %v3124_v12, %v1615_v33  ;;  %1764 = vadd.xlane.f32.xlu0 %v2536_v31  ;;  %v1613_v6 = vpop.xlane.xlu0 %1612 }
 0x47b   : > { %v3255_v57 = vsub.f32 %v3127_v14, %v1613_v6 }
 0x47c   : > { %v2538_v10 = vpop.eup %2537  ;;  %v1710_v42 = vmul.f32 1.442695, %v3252_v54 }
 0x47d   : > { %v2540_v44 = vpop.eup %2539  ;;  %v1708_v46 = vmul.f32 1.442695, %v3255_v57  ;;  %1770 = vadd.xlane.f32.xlu1 %v2538_v10  ;;  %v1619_v36 = vpop.xlane.xlu1 %1618 }
 0x47e   : > { %2541 = vpow2.f32 %v1710_v42  ;;  %v3260_v24 = vsub.f32 %v3132_v16, %v1619_v36  ;;  %1768 = vadd.xlane.f32.xlu0 %v2540_v44  ;;  %v1617_v12 = vpop.xlane.xlu0 %1616 }
 0x47f   : > { %2543 = vpow2.f32 %v1708_v46  ;;  %v3263_v59 = vsub.f32 %v3135_v18, %v1617_v12 }
 0x480   : > { %v1714_v14 = vmul.f32 1.442695, %v3260_v24 }
 0x481   : > { %v1712_v58 = vmul.f32 1.442695, %v3263_v59  ;;  %v1623_v47 = vpop.xlane.xlu1 %1622 }
 0x482   : > { %2545 = vpow2.f32 %v1714_v14  ;;  %v3268_v41 = vsub.f32 %v3140_v20, %v1623_v47  ;;  %v1621_v40 = vpop.xlane.xlu0 %1620 }
 0x483   : > { %2547 = vpow2.f32 %v1712_v58  ;;  %v3271_v16 = vsub.f32 %v3143_v22, %v1621_v40 }
 0x484   : > { %v1718_v60 = vmul.f32 1.442695, %v3268_v41 }
 0x485   : > { %v1716_v61 = vmul.f32 1.442695, %v3271_v16  ;;  %v1627_v18 = vpop.xlane.xlu1 %1626 }
 0x486   : > { %2549 = vpow2.f32 %v1718_v60  ;;  %v3276_v56 = vsub.f32 %v3148_v25, %v1627_v18  ;;  %v1625_v43 = vpop.xlane.xlu0 %1624 }
 0x487   : > { %2551 = vpow2.f32 %v1716_v61  ;;  %v3279_v7 = vsub.f32 %v3151_v27, %v1625_v43 }
 0x488   : > { %v2542_v20 = vpop.eup %2541  ;;  %v1722_v9 = vmul.f32 1.442695, %v3276_v56 }
 0x489   : > { %v2544_v63 = vpop.eup %2543  ;;  %v1720_v22 = vmul.f32 1.442695, %v3279_v7  ;;  %1774 = vadd.xlane.f32.xlu1 %v2542_v20  ;;  %v1631_v2 = vpop.xlane.xlu1 %1630 }
 0x48a   : > { %2553 = vpow2.f32 %v1722_v9  ;;  %v3284_v13 = vsub.f32 %v3156_v30, %v1631_v2  ;;  %1772 = vadd.xlane.f32.xlu0 %v2544_v63  ;;  %v1629_v25 = vpop.xlane.xlu0 %1628 }
 0x48b   : > { %2555 = vpow2.f32 %v1720_v22  ;;  %v3287_v15 = vsub.f32 %v3159_v32, %v1629_v25 }
 0x48c   : > { %v2546_v27 = vpop.eup %2545  ;;  %v1726_v17 = vmul.f32 1.442695, %v3284_v13 }
 0x48d   : > { %v2548_v19 = vpop.eup %2547  ;;  %v1724_v3 = vmul.f32 1.442695, %v3287_v15  ;;  %1778 = vadd.xlane.f32.xlu1 %v2546_v27  ;;  %v1635_v4 = vpop.xlane.xlu1 %1634 }
 0x48e   : > { %2557 = vpow2.f32 %v1726_v17  ;;  %v3292_v26 = vsub.f32 %v3164_v34, %v1635_v4  ;;  %1776 = vadd.xlane.f32.xlu0 %v2548_v19  ;;  %v1633_v30 = vpop.xlane.xlu0 %1632 }
 0x48f   : > { %2559 = vpow2.f32 %v1724_v3  ;;  %v3295_v28 = vsub.f32 %v3167_v37, %v1633_v30 }
 0x490   : > { %v2550_v32 = vpop.eup %2549  ;;  %v1730_v31 = vmul.f32 1.442695, %v3292_v26 }
 0x491   : > { %v2552_v33 = vpop.eup %2551  ;;  %v1728_v6 = vmul.f32 1.442695, %v3295_v28  ;;  %1782 = vadd.xlane.f32.xlu1 %v2550_v32 }
 0x492   : > { %2561 = vpow2.f32 %v1730_v31  ;;  %1780 = vadd.xlane.f32.xlu0 %v2552_v33 }
 0x493   : > { %2563 = vpow2.f32 %v1728_v6 }
 0x494   : > { %v2554_v10 = vpop.eup %2553 }
 0x495   : > { %v2556_v42 = vpop.eup %2555  ;;  %1786 = vadd.xlane.f32.xlu1 %v2554_v10 }
 0x496   : > { %1784 = vadd.xlane.f32.xlu0 %v2556_v42 }
 0x498   : > { %v2558_v34 = vpop.eup %2557 }
 0x499   : > { %v2560_v44 = vpop.eup %2559  ;;  %1790 = vadd.xlane.f32.xlu1 %v2558_v34 }
 0x49a   : > { %1788 = vadd.xlane.f32.xlu0 %v2560_v44 }
 0x49c   : > { %v2562_v37 = vpop.eup %2561 }
 0x49d   : > { %v2564_v46 = vpop.eup %2563  ;;  %1794 = vadd.xlane.f32.xlu1 %v2562_v37 }
 0x49e   : > { %1792 = vadd.xlane.f32.xlu0 %v2564_v46 }
 0x4c6   : > { %v1735_v36 = vpop.xlane.xlu1 %1734 }
 0x4c7   : > { %2565 = vlog2.f32 %v1735_v36 }
 0x4ca   : > { %v1739_v12 = vpop.xlane.xlu1 %1738 }
 0x4cb   : > { %2567 = vlog2.f32 %v1739_v12  ;;  %v1733_v14 = vpop.xlane.xlu0 %1732 }
 0x4cc   : > { %2569 = vlog2.f32 %v1733_v14 }
 0x4cf   : > { %v1737_v58 = vpop.xlane.xlu0 %1736 }
 0x4d0   : > { %2571 = vlog2.f32 %v1737_v58 }
 0x4d1   : > { %v2566_v47 = vpop.eup %2565 }
 0x4d2   : > { %v1799_v40 = vmul.f32 0.6931472, %v2566_v47 }
 0x4d4   : > { %v1861_v60 = vsub.f32 %v3172_v0, %v1799_v40 }
 0x4d5   : > { %v2568_v61 = vpop.eup %2567 }
 0x4d6   : > { %v2570_v18 = vpop.eup %2569  ;;  %1893 = vst [vmem:[%s3303_s28 + $0x8] sm:$0xff] %v1861_v60  ;;  %v1803_v43 = vmul.f32 0.6931472, %v2568_v61  ;;  %v1743_v20 = vpop.xlane.xlu1 %1742 }
 0x4d7   : > { %v1797_v9 = vmul.f32 0.6931472, %v2570_v18  ;;  %2573 = vlog2.f32 %v1743_v20  ;;  %v1741_v63 = vpop.xlane.xlu0 %1740 }
 0x4d8   : > { %v1863_v22 = vsub.f32 %v3176_v49, %v1803_v43  ;;  %2575 = vlog2.f32 %v1741_v63 }
 0x4d9   : > { %v1860_v2 = vsub.f32 %v3179_v51, %v1797_v9 }
 0x4da   : > { %v2572_v25 = vpop.eup %2571  ;;  %1895 = vst [vmem:[%s3303_s28 + $0x18] sm:$0xff] %v1863_v22  ;;  %v1747_v27 = vpop.xlane.xlu1 %1746 }
 0x4db   : > { %1892 = vst [vmem:[%s3303_s28] sm:$0xff] %v1860_v2  ;;  %v1801_v0 = vmul.f32 0.6931472, %v2572_v25  ;;  %2577 = vlog2.f32 %v1747_v27  ;;  %v1745_v17 = vpop.xlane.xlu0 %1744 }
 0x4dc   : > { %2579 = vlog2.f32 %v1745_v17 }
 0x4dd   : > { %v1862_v19 = vsub.f32 %v3184_v38, %v1801_v0 }
 0x4df   : > { %1894 = vst [vmem:[%s3303_s28 + $0x10] sm:$0xff] %v1862_v19 }
 0x4e1   : > { %v2574_v3 = vpop.eup %2573 }
 0x4e2   : > { %v2576_v4 = vpop.eup %2575  ;;  %v1807_v30 = vmul.f32 0.6931472, %v2574_v3 }
 0x4e3   : > { %v1805_v49 = vmul.f32 0.6931472, %v2576_v4 }
 0x4e4   : > { %v1865_v51 = vsub.f32 %v3188_v8, %v1807_v30 }
 0x4e5   : > { %v2578_v32 = vpop.eup %2577  ;;  %v1864_v31 = vsub.f32 %v3191_v29, %v1805_v49 }
 0x4e6   : > { %v2580_v33 = vpop.eup %2579  ;;  %1897 = vst [vmem:[%s3303_s28 + $0x28] sm:$0xff] %v1865_v51  ;;  %v1811_v6 = vmul.f32 0.6931472, %v2578_v32  ;;  %v1751_v10 = vpop.xlane.xlu1 %1750 }
 0x4e7   : > { %1896 = vst [vmem:[%s3303_s28 + $0x20] sm:$0xff] %v1864_v31  ;;  %v1809_v42 = vmul.f32 0.6931472, %v2580_v33  ;;  %2581 = vlog2.f32 %v1751_v10  ;;  %v1749_v38 = vpop.xlane.xlu0 %1748 }
 0x4e8   : > { %v1867_v34 = vsub.f32 %v3196_v5, %v1811_v6  ;;  %2583 = vlog2.f32 %v1749_v38 }
 0x4e9   : > { %v1866_v44 = vsub.f32 %v3199_v45, %v1809_v42 }
 0x4ea   : > { %1899 = vst [vmem:[%s3303_s28 + $0x38] sm:$0xff] %v1867_v34  ;;  %v1755_v8 = vpop.xlane.xlu1 %1754 }
 0x4eb   : > { %1898 = vst [vmem:[%s3303_s28 + $0x30] sm:$0xff] %v1866_v44  ;;  %2585 = vlog2.f32 %v1755_v8  ;;  %v1753_v29 = vpop.xlane.xlu0 %1752 }
 0x4ec   : > { %2587 = vlog2.f32 %v1753_v29 }
 0x4f1   : > { %v2582_v37 = vpop.eup %2581 }
 0x4f2   : > { %v2584_v46 = vpop.eup %2583  ;;  %v1815_v36 = vmul.f32 0.6931472, %v2582_v37 }
 0x4f3   : > { %v1813_v12 = vmul.f32 0.6931472, %v2584_v46 }
 0x4f4   : > { %v1869_v14 = vsub.f32 %v3204_v50, %v1815_v36 }
 0x4f5   : > { %v2586_v5 = vpop.eup %2585  ;;  %v1868_v58 = vsub.f32 %v3207_v52, %v1813_v12 }
 0x4f6   : > { %v2588_v47 = vpop.eup %2587  ;;  %1901 = vst [vmem:[%s3303_s28 + $0x48] sm:$0xff] %v1869_v14  ;;  %v1819_v45 = vmul.f32 0.6931472, %v2586_v5  ;;  %v1759_v40 = vpop.xlane.xlu1 %1758 }
 0x4f7   : > { %1900 = vst [vmem:[%s3303_s28 + $0x40] sm:$0xff] %v1868_v58  ;;  %v1817_v60 = vmul.f32 0.6931472, %v2588_v47  ;;  %2589 = vlog2.f32 %v1759_v40  ;;  %v1757_v61 = vpop.xlane.xlu0 %1756 }
 0x4f8   : > { %v1871_v18 = vsub.f32 %v3212_v35, %v1819_v45  ;;  %2591 = vlog2.f32 %v1757_v61 }
 0x4f9   : > { %v1870_v43 = vsub.f32 %v3215_v39, %v1817_v60 }
 0x4fa   : > { %1903 = vst [vmem:[%s3303_s28 + $0x58] sm:$0xff] %v1871_v18  ;;  %v1763_v50 = vpop.xlane.xlu1 %1762 }
 0x4fb   : > { %1902 = vst [vmem:[%s3303_s28 + $0x50] sm:$0xff] %v1870_v43  ;;  %2593 = vlog2.f32 %v1763_v50  ;;  %v1761_v52 = vpop.xlane.xlu0 %1760 }
 0x4fc   : > { %2595 = vlog2.f32 %v1761_v52 }
 0x501   : > { %v2590_v20 = vpop.eup %2589 }
 0x502   : > { %v2592_v9 = vpop.eup %2591  ;;  %v1823_v63 = vmul.f32 0.6931472, %v2590_v20 }
 0x503   : > { %v1821_v22 = vmul.f32 0.6931472, %v2592_v9 }
 0x504   : > { %v1873_v2 = vsub.f32 %v3220_v53, %v1823_v63 }
 0x505   : > { %v2594_v35 = vpop.eup %2593  ;;  %v1872_v25 = vsub.f32 %v3223_v55, %v1821_v22 }
 0x506   : > { %v2596_v27 = vpop.eup %2595  ;;  %1905 = vst [vmem:[%s3303_s28 + $0x68] sm:$0xff] %v1873_v2  ;;  %v1827_v39 = vmul.f32 0.6931472, %v2594_v35  ;;  %v1767_v0 = vpop.xlane.xlu1 %1766 }
 0x507   : > { %1904 = vst [vmem:[%s3303_s28 + $0x60] sm:$0xff] %v1872_v25  ;;  %v1825_v17 = vmul.f32 0.6931472, %v2596_v27  ;;  %2597 = vlog2.f32 %v1767_v0  ;;  %v1765_v19 = vpop.xlane.xlu0 %1764 }
 0x508   : > { %v1875_v3 = vsub.f32 %v3228_v62, %v1827_v39  ;;  %2599 = vlog2.f32 %v1765_v19 }
 0x509   : > { %v1874_v4 = vsub.f32 %v3231_v1, %v1825_v17 }
 0x50a   : > { %1907 = vst [vmem:[%s3303_s28 + $0x78] sm:$0xff] %v1875_v3  ;;  %v1771_v53 = vpop.xlane.xlu1 %1770 }
 0x50b   : > { %1906 = vst [vmem:[%s3303_s28 + $0x70] sm:$0xff] %v1874_v4  ;;  %2601 = vlog2.f32 %v1771_v53  ;;  %v1769_v55 = vpop.xlane.xlu0 %1768 }
 0x50c   : > { %2603 = vlog2.f32 %v1769_v55 }
 0x511   : > { %v2598_v30 = vpop.eup %2597 }
 0x512   : > { %v2600_v49 = vpop.eup %2599  ;;  %v1831_v51 = vmul.f32 0.6931472, %v2598_v30 }
 0x513   : > { %v1829_v32 = vmul.f32 0.6931472, %v2600_v49 }
 0x514   : > { %v1877_v31 = vsub.f32 %v3236_v48, %v1831_v51 }
 0x515   : > { %v2602_v62 = vpop.eup %2601  ;;  %v1876_v33 = vsub.f32 %v3239_v11, %v1829_v32 }
 0x516   : > { %v2604_v6 = vpop.eup %2603  ;;  %1909 = vst [vmem:[%s3303_s28 + $0x88] sm:$0xff] %v1877_v31  ;;  %v1835_v1 = vmul.f32 0.6931472, %v2602_v62  ;;  %v1775_v10 = vpop.xlane.xlu1 %1774 }
 0x517   : > { %1908 = vst [vmem:[%s3303_s28 + $0x80] sm:$0xff] %v1876_v33  ;;  %v1833_v42 = vmul.f32 0.6931472, %v2604_v6  ;;  %2605 = vlog2.f32 %v1775_v10  ;;  %v1773_v38 = vpop.xlane.xlu0 %1772 }
 0x518   : > { %v1879_v34 = vsub.f32 %v3244_v21, %v1835_v1  ;;  %2607 = vlog2.f32 %v1773_v38 }
 0x519   : > { %v1878_v44 = vsub.f32 %v3247_v23, %v1833_v42 }
 0x51a   : > { %1911 = vst [vmem:[%s3303_s28 + $0x98] sm:$0xff] %v1879_v34  ;;  %v1779_v8 = vpop.xlane.xlu1 %1778 }
 0x51b   : > { %1910 = vst [vmem:[%s3303_s28 + $0x90] sm:$0xff] %v1878_v44  ;;  %2609 = vlog2.f32 %v1779_v8  ;;  %v1777_v48 = vpop.xlane.xlu0 %1776 }
 0x51c   : > { %2611 = vlog2.f32 %v1777_v48 }
 0x51e   : > { %v1783_v11 = vpop.xlane.xlu1 %1782 }
 0x51f   : > { %2613 = vlog2.f32 %v1783_v11  ;;  %v1781_v29 = vpop.xlane.xlu0 %1780 }
 0x520   : > { %2615 = vlog2.f32 %v1781_v29 }
 0x521   : > { %v2606_v37 = vpop.eup %2605 }
 0x522   : > { %v2608_v46 = vpop.eup %2607  ;;  %v1839_v36 = vmul.f32 0.6931472, %v2606_v37  ;;  %v1787_v12 = vpop.xlane.xlu1 %1786 }
 0x523   : > { %v1837_v21 = vmul.f32 0.6931472, %v2608_v46  ;;  %2617 = vlog2.f32 %v1787_v12  ;;  %v1785_v14 = vpop.xlane.xlu0 %1784 }
 0x524   : > { %v1881_v23 = vsub.f32 %v3252_v54, %v1839_v36  ;;  %2619 = vlog2.f32 %v1785_v14 }
 0x525   : > { %v2610_v5 = vpop.eup %2609  ;;  %v1880_v58 = vsub.f32 %v3255_v57, %v1837_v21 }
 0x526   : > { %v2612_v47 = vpop.eup %2611  ;;  %1913 = vst [vmem:[%s3303_s28 + $0xa8] sm:$0xff] %v1881_v23  ;;  %v1843_v45 = vmul.f32 0.6931472, %v2610_v5  ;;  %v1791_v40 = vpop.xlane.xlu1 %1790 }
 0x527   : > { %1912 = vst [vmem:[%s3303_s28 + $0xa0] sm:$0xff] %v1880_v58  ;;  %v1841_v60 = vmul.f32 0.6931472, %v2612_v47  ;;  %2621 = vlog2.f32 %v1791_v40  ;;  %v1789_v61 = vpop.xlane.xlu0 %1788 }
 0x528   : > { %v1883_v18 = vsub.f32 %v3260_v24, %v1843_v45  ;;  %2623 = vlog2.f32 %v1789_v61 }
 0x529   : > { %v2614_v43 = vpop.eup %2613  ;;  %v1882_v54 = vsub.f32 %v3263_v59, %v1841_v60 }
 0x52a   : > { %v2616_v50 = vpop.eup %2615  ;;  %1915 = vst [vmem:[%s3303_s28 + $0xb8] sm:$0xff] %v1883_v18  ;;  %v1847_v57 = vmul.f32 0.6931472, %v2614_v43  ;;  %v1795_v52 = vpop.xlane.xlu1 %1794 }
 0x52b   : > { %1914 = vst [vmem:[%s3303_s28 + $0xb0] sm:$0xff] %v1882_v54  ;;  %v1845_v20 = vmul.f32 0.6931472, %v2616_v50  ;;  %2625 = vlog2.f32 %v1795_v52  ;;  %v1793_v9 = vpop.xlane.xlu0 %1792 }
 0x52c   : > { %v1885_v63 = vsub.f32 %v3268_v41, %v1847_v57  ;;  %2627 = vlog2.f32 %v1793_v9 }
 0x52d   : > { %v2618_v24 = vpop.eup %2617  ;;  %v1884_v22 = vsub.f32 %v3271_v16, %v1845_v20 }
 0x52e   : > { %v2620_v2 = vpop.eup %2619  ;;  %1917 = vst [vmem:[%s3303_s28 + $0xc8] sm:$0xff] %v1885_v63  ;;  %v1851_v59 = vmul.f32 0.6931472, %v2618_v24 }
 0x52f   : > { %1916 = vst [vmem:[%s3303_s28 + $0xc0] sm:$0xff] %v1884_v22  ;;  %v1849_v35 = vmul.f32 0.6931472, %v2620_v2 }
 0x530   : > { %v1887_v25 = vsub.f32 %v3276_v56, %v1851_v59 }
 0x531   : > { %v2622_v27 = vpop.eup %2621  ;;  %v1886_v39 = vsub.f32 %v3279_v7, %v1849_v35 }
 0x532   : > { %v2624_v0 = vpop.eup %2623  ;;  %1919 = vst [vmem:[%s3303_s28 + $0xd8] sm:$0xff] %v1887_v25  ;;  %v1855_v41 = vmul.f32 0.6931472, %v2622_v27 }
 0x533   : > { %1918 = vst [vmem:[%s3303_s28 + $0xd0] sm:$0xff] %v1886_v39  ;;  %v1853_v17 = vmul.f32 0.6931472, %v2624_v0 }
 0x534   : > { %v1889_v16 = vsub.f32 %v3284_v13, %v1855_v41 }
 0x535   : > { %v2626_v19 = vpop.eup %2625  ;;  %v1888_v3 = vsub.f32 %v3287_v15, %v1853_v17 }
 0x536   : > { %v2628_v4 = vpop.eup %2627  ;;  %1921 = vst [vmem:[%s3303_s28 + $0xe8] sm:$0xff] %v1889_v16  ;;  %v1859_v53 = vmul.f32 0.6931472, %v2626_v19 }
 0x537   : > { %1920 = vst [vmem:[%s3303_s28 + $0xe0] sm:$0xff] %v1888_v3  ;;  %v1857_v56 = vmul.f32 0.6931472, %v2628_v4 }
 0x538   : > { %v1891_v55 = vsub.f32 %v3292_v26, %v1859_v53 }
 0x539   : > { %v1890_v7 = vsub.f32 %v3295_v28, %v1857_v56 }
 0x53a   : > { %1923 = vst [vmem:[%s3303_s28 + $0xf8] sm:$0xff] %v1891_v55 }
 0x53b   : > { %1922 = vst [vmem:[%s3303_s28 + $0xf0] sm:$0xff] %v1890_v7 }
 0x53c PF: > { %s19_s30 = sadd.s32 1, %s2635_s30  }
 0x53d   : > { %p16_p4 = scmp.ge.s32.totalorder %s19_s30, 4  }
 0x53f   :  { %18 = sbr.rel (!%p16_p4) target bundleno = 1 (0x1), region = 86 }

</bundles_post_ra>
